<compile_context>
chip_gen: v7x
topology: tpu7x:2x2x1
jax: 0.10.0
libtpu: 0.0.40
codegen_flags: <defaults>
</compile_context>

<pallas_src>
import functools

import jax
import jax.numpy as jnp
import numpy as np
from jax import lax
from jax.experimental import pallas as pl
from jax.experimental.pallas import tpu as pltpu


def _full_unroll(T, B, H):
    # Fully unroll the time loop at trace time only while T is short AND the
    # per-step live gate state (B x 4H f32 values) stays within a few vregs,
    # so a long unroll cannot spill the 64-entry vreg file.
    return T <= 32 and B * 4 * H <= 4096


def _vmem_estimate_bytes(T, B, H):
    """Rough padded-VMEM footprint (f32) of the resident buffers."""
    sub = -(-max(B, 1) // 8) * 8
    lane = lambda n: -(-n // 128) * 128
    per_t = sub * (lane(1) + lane(4 * H) + lane(H))       # x + proj + hseq slices
    weights = 3 * H * lane(4 * H) + 8 * lane(4 * H) + 8 * lane(H)
    return 4 * (T * per_t + weights + T * sub)


# ----------------------------- Pallas kernel ------------------------------ #
def _simple_lstm_kernel(
    x_ref,        # (T, B, 1)     f32  inputs, time-major
    wih0_ref,     # (1, 4H)       f32  layer-0 input weights (gate order i|f|g|o)
    whh0_ref,     # (H, 4H)       f32  layer-0 recurrent weights, pre-transposed
    b0_ref,       # (1, 4H)       f32  layer-0 bias (b_ih + b_hh)
    wih1_ref,     # (H, 4H)       f32  layer-1 input weights, pre-transposed
    whh1_ref,     # (H, 4H)       f32  layer-1 recurrent weights, pre-transposed
    b1_ref,       # (1, 4H)       f32  layer-1 bias (b_ih + b_hh)
    fcw_ref,      # (1, H)        f32  final Linear weight (row)
    fcb_ref,      # (1,)          f32  final Linear bias (SMEM scalar)
    out_ref,      # (T, B)        f32  output
    proj_ref,     # (T, B, 4H)    f32  VMEM scratch: layer-1 gate-input projections
    hseq_ref,     # (T, B, H)     f32  VMEM scratch: layer-1 hidden states
    *,
    unroll_time,  # static: fully unroll the time loop at trace time
):
    T, B, _ = x_ref.shape
    H = whh0_ref.shape[0]
    G = 4 * H

    # Hoisted once (JAX does not CSE broadcast_in_dim).
    wih0 = wih0_ref[...]              # (1, G)
    b0 = b0_ref[...]                  # (1, G)
    whh0 = whh0_ref[...]              # (H, G)
    wih1 = wih1_ref[...]              # (H, G)
    whh1 = whh1_ref[...]              # (H, G)
    b1 = b1_ref[...]                  # (1, G)

    lane = lax.broadcasted_iota(jnp.int32, (B, G), 1)
    g_mask = (lane >= 2 * H) & (lane < 3 * H)     # tanh lanes (cell gate "g")

    def gate_math(gates, c):
        """Fused LSTM gate nonlinearities on one lane-dense (B, 4H) vector."""
        act = jnp.where(g_mask, jnp.tanh(gates), jax.nn.sigmoid(gates))
        i_g = act[:, 0 * H:1 * H]     # static lane slices -> XLU lane rotations
        f_g = act[:, 1 * H:2 * H]
        g_g = act[:, 2 * H:3 * H]
        o_g = act[:, 3 * H:4 * H]
        c_new = f_g * c + i_g * g_g
        h_new = o_g * jnp.tanh(c_new)
        return h_new, c_new

    def run_layer(step_fn):
        h = jnp.zeros((B, H), jnp.float32)
        c = jnp.zeros((B, H), jnp.float32)
        if unroll_time:
            # Full trace-time unroll: constant indices, max LLO scheduler visibility.
            for t in range(T):
                h, c = step_fn(t, h, c)
        else:
            def body(t, carry):
                return step_fn(t, *carry)
            lax.fori_loop(0, T, body, (h, c), unroll=8)

    # -------- layer 0: inline input term (input_size == 1 -> one FMA) -------
    def step0(t, h, c):
        inp = x_ref[t] * wih0 + b0                                    # (B, G)
        gates = inp + jnp.dot(h, whh0, preferred_element_type=jnp.float32)
        h_new, c_new = gate_math(gates, c)
        # Layer-1 gate-input projection for this timestep; it is off the
        # carried h/c dependency chain, so it can retire lazily.
        proj_ref[t] = jnp.dot(h_new, wih1,
                              preferred_element_type=jnp.float32) + b1
        return h_new, c_new

    run_layer(step0)

    # -------- layer 1: precomputed (B, 4H) input term per timestep ----------
    def step1(t, h, c):
        gates = proj_ref[t] + jnp.dot(h, whh1, preferred_element_type=jnp.float32)
        h_new, c_new = gate_math(gates, c)
        hseq_ref[t] = h_new
        return h_new, c_new

    run_layer(step1)

    # -------- ReLU + Linear(H -> 1): elementwise mul + lane reduce ----------
    h_all = jnp.maximum(hseq_ref[...], 0.0)            # (T, B, H)
    y = jnp.sum(h_all * fcw_ref[...], axis=-1)         # (T, B)
    out_ref[...] = y + fcb_ref[0]                      # scalar bias from SMEM


# ------------------------------ JAX wrapper -------------------------------- #
@functools.partial(jax.jit, static_argnames=("hidden_size",))
def simple_lstm_forward(x, params, *, hidden_size):
    """x: (B, T) float32  ->  (B, T) float32  (matches SimpleLSTM.forward)."""
    B, T = x.shape
    H = hidden_size
    G = 4 * H

    # Time-major input with a trailing singleton so x_ref[t] is a (B, 1) column.
    x_tb = jnp.transpose(x, (1, 0)).astype(jnp.float32)[:, :, None]   # (T, B, 1)

    # Kernel-layout params: gate blocks [i|f|g|o] stacked along the 4H output
    # (lane) axis, weights pre-transposed so the kernel has zero transposes.
    wih0 = params["w_ih0"].reshape(G, 1).T.astype(jnp.float32)        # (1, G)
    whh0 = params["w_hh0"].T.astype(jnp.float32)                      # (H, G)
    b0 = params["b0"].reshape(1, G).astype(jnp.float32)               # (1, G)
    wih1 = params["w_ih1"].T.astype(jnp.float32)                      # (H, G)
    whh1 = params["w_hh1"].T.astype(jnp.float32)                      # (H, G)
    b1 = params["b1"].reshape(1, G).astype(jnp.float32)               # (1, G)
    fcw = params["fc_w"].reshape(1, H).astype(jnp.float32)            # (1, H)
    fcb = params["fc_b"].reshape((1,)).astype(jnp.float32)            # (1,)

    kernel = functools.partial(_simple_lstm_kernel,
                               unroll_time=_full_unroll(T, B, H))

    vmem = pl.BlockSpec(memory_space=pltpu.MemorySpace.VMEM)
    smem = pl.BlockSpec(memory_space=pltpu.MemorySpace.SMEM)

    call_kwargs = {}
    est = _vmem_estimate_bytes(T, B, H)
    if est > 12 * 2**20:
        # Raise the scoped VMEM limit once resident buffers get large
        # (v5e default is 16 MiB; keep headroom w.r.t. v7x's 64 MiB physical).
        call_kwargs["compiler_params"] = pltpu.CompilerParams(
            vmem_limit_bytes=int(min(100 * 2**20, 2 * est)))

    out_tb = pl.pallas_call(
        kernel,
        out_shape=jax.ShapeDtypeStruct((T, B), jnp.float32),
        in_specs=[vmem, vmem, vmem, vmem, vmem, vmem, vmem, vmem, smem],
        out_specs=vmem,
        scratch_shapes=[
            pltpu.VMEM((T, B, G), jnp.float32),   # layer-1 gate-input projections
            pltpu.VMEM((T, B, H), jnp.float32),   # layer-1 hidden-state sequence
        ],
        **call_kwargs,
    )(x_tb, wih0, whh0, b0, wih1, whh1, b1, fcw, fcb)

    return jnp.transpose(out_tb, (1, 0))  # (B, T)


# ------------------------- pure-JAX reference ------------------------------ #
def simple_lstm_reference(x, params, hidden_size):
    B, T = x.shape
    H = hidden_size
    x3 = x[:, :, None].astype(jnp.float32)  # (B, T, 1)

    def run_layer(inp, w_ih, w_hh, b):
        h = jnp.zeros((B, H), jnp.float32)
        c = jnp.zeros((B, H), jnp.float32)
        outs = []
        for t in range(T):
            gates = inp[:, t, :] @ w_ih.T + h @ w_hh.T + b
            i = jax.nn.sigmoid(gates[:, 0 * H:1 * H])
            f = jax.nn.sigmoid(gates[:, 1 * H:2 * H])
            g = jnp.tanh(gates[:, 2 * H:3 * H])
            o = jax.nn.sigmoid(gates[:, 3 * H:4 * H])
            c = f * c + i * g
            h = o * jnp.tanh(c)
            outs.append(h)
        return jnp.stack(outs, axis=1)  # (B, T, H)

    h1 = run_layer(x3, params["w_ih0"], params["w_hh0"], params["b0"])
    h2 = run_layer(h1, params["w_ih1"], params["w_hh1"], params["b1"])
    out = jnp.maximum(h2, 0.0) @ params["fc_w"].T + params["fc_b"]
    return out[:, :, 0]


# ---------------------------- parameter init ------------------------------- #
def init_params(key, input_size, hidden_size, output_size):
    """PyTorch-shaped params; uniform(-1/sqrt(H), 1/sqrt(H)) like nn.LSTM."""
    H = hidden_size
    stdv = 1.0 / np.sqrt(H)
    ks = jax.random.split(key, 12)
    u = lambda k, shape: jax.random.uniform(k, shape, jnp.float32, -stdv, stdv)
    return {
        # layer 0
        "w_ih0": u(ks[0], (4 * H, input_size)),
        "w_hh0": u(ks[1], (4 * H, H)),
        "b0": (u(ks[2], (1, 4 * H)) + u(ks[3], (1, 4 * H))),   # b_ih + b_hh
        # layer 1
        "w_ih1": u(ks[4], (4 * H, H)),
        "w_hh1": u(ks[5], (4 * H, H)),
        "b1": (u(ks[6], (1, 4 * H)) + u(ks[7], (1, 4 * H))),
        # fc
        "fc_w": u(ks[8], (output_size, H)),
        "fc_b": u(ks[9], (1, output_size)),
    }


# --------------------------------- main ------------------------------------ #
if __name__ == "__main__":
    INPUT_SIZE = 1      # forced by x.unsqueeze(-1)
    HIDDEN_SIZE = 32
    OUTPUT_SIZE = 1     # forced by out.squeeze(-1)

    key = jax.random.PRNGKey(0)

    # (B=2, T=8) exercises the fully-unrolled path; (B=2, T=48) exercises the
    # lax.fori_loop(unroll=8) fallback (review correctness concern).
    for BATCH, SEQ in [(2, 8), (2, 48)]:
        key, k_x, k_p = jax.random.split(key, 3)
        x = jax.random.normal(k_x, (BATCH, SEQ), jnp.float32)
        params = init_params(k_p, INPUT_SIZE, HIDDEN_SIZE, OUTPUT_SIZE)

        out = simple_lstm_forward(x, params, hidden_size=HIDDEN_SIZE)
        out = jax.block_until_ready(out)

        ref = simple_lstm_reference(x, params, HIDDEN_SIZE)
        np.testing.assert_allclose(np.asarray(out), np.asarray(ref),
                                   rtol=1e-4, atol=1e-4)
        assert out.shape == (BATCH, SEQ)

    print("KERNEL_OK")
</pallas_src>

<mosaic_0001>
module attributes {stable_mosaic.version = 11 : i64} {
  func.func @_simple_lstm_kernel(%arg0: memref<8x2x1xf32, #tpu.memory_space<vmem>>, %arg1: memref<1x128xf32, #tpu.memory_space<vmem>>, %arg2: memref<32x128xf32, #tpu.memory_space<vmem>>, %arg3: memref<1x128xf32, #tpu.memory_space<vmem>>, %arg4: memref<32x128xf32, #tpu.memory_space<vmem>>, %arg5: memref<32x128xf32, #tpu.memory_space<vmem>>, %arg6: memref<1x128xf32, #tpu.memory_space<vmem>>, %arg7: memref<1x32xf32, #tpu.memory_space<vmem>>, %arg8: memref<1xf32, #tpu.memory_space<smem>>, %arg9: memref<8x2xf32, #tpu.memory_space<vmem>>, %arg10: memref<8x2x128xf32, #tpu.memory_space<vmem>>, %arg11: memref<8x2x32xf32, #tpu.memory_space<vmem>>) attributes {dimension_semantics = [], scalar_prefetch = 0 : i64, scratch_operands = 2 : i64, tpu.core_type = #tpu.core_type<tc>} {
    %c0 = arith.constant 0 : index
    %c0_0 = arith.constant 0 : index
    %0 = vector.load %arg1[%c0, %c0_0] : memref<1x128xf32, #tpu.memory_space<vmem>>, vector<1x128xf32>
    %c0_1 = arith.constant 0 : index
    %c0_2 = arith.constant 0 : index
    %1 = vector.load %arg3[%c0_1, %c0_2] : memref<1x128xf32, #tpu.memory_space<vmem>>, vector<1x128xf32>
    %c0_3 = arith.constant 0 : index
    %c0_4 = arith.constant 0 : index
    %2 = vector.load %arg2[%c0_3, %c0_4] : memref<32x128xf32, #tpu.memory_space<vmem>>, vector<32x128xf32>
    %c0_5 = arith.constant 0 : index
    %c0_6 = arith.constant 0 : index
    %3 = vector.load %arg4[%c0_5, %c0_6] : memref<32x128xf32, #tpu.memory_space<vmem>>, vector<32x128xf32>
    %c0_7 = arith.constant 0 : index
    %c0_8 = arith.constant 0 : index
    %4 = vector.load %arg5[%c0_7, %c0_8] : memref<32x128xf32, #tpu.memory_space<vmem>>, vector<32x128xf32>
    %c0_9 = arith.constant 0 : index
    %c0_10 = arith.constant 0 : index
    %5 = vector.load %arg6[%c0_9, %c0_10] : memref<1x128xf32, #tpu.memory_space<vmem>>, vector<1x128xf32>
    %6 = tpu.iota {dimensions = array<i32: 1>} : vector<2x128xi32>
    %c64_i32 = arith.constant 64 : i32
    %7 = vector.broadcast %c64_i32 : i32 to vector<2x128xi32>
    %8 = arith.cmpi sge, %6, %7 : vector<2x128xi32>
    %c96_i32 = arith.constant 96 : i32
    %9 = vector.broadcast %c96_i32 : i32 to vector<2x128xi32>
    %10 = arith.cmpi slt, %6, %9 : vector<2x128xi32>
    %11 = arith.andi %8, %10 : vector<2x128xi1>
    %cst = arith.constant 0.000000e+00 : f32
    %12 = vector.broadcast %cst : f32 to vector<2x32xf32>
    %cst_11 = arith.constant 0.000000e+00 : f32
    %13 = vector.broadcast %cst_11 : f32 to vector<2x32xf32>
    %c0_12 = arith.constant 0 : index
    %c0_13 = arith.constant 0 : index
    %c0_14 = arith.constant 0 : index
    %14 = vector.load %arg0[%c0_12, %c0_13, %c0_14] : memref<8x2x1xf32, #tpu.memory_space<vmem>>, vector<1x2x1xf32>
    %15 = vector.shape_cast %14 : vector<1x2x1xf32> to vector<2x1xf32>
    %16 = vector.broadcast %15 : vector<2x1xf32> to vector<2x128xf32>
    %17 = vector.broadcast %0 : vector<1x128xf32> to vector<2x128xf32>
    %18 = arith.mulf %16, %17 : vector<2x128xf32>
    %19 = vector.broadcast %1 : vector<1x128xf32> to vector<2x128xf32>
    %20 = arith.addf %18, %19 : vector<2x128xf32>
    %cst_15 = arith.constant dense<0.000000e+00> : vector<2x128xf32>
    %21 = tpu.matmul %12, %2, %cst_15 {dimension_numbers = #tpu.dot_dimension_numbers<[1], [0], [0], [1], [0, 0, 1, 1], [], []>} : vector<2x32xf32>, vector<32x128xf32>, vector<2x128xf32> -> vector<2x128xf32>
    %22 = arith.addf %20, %21 : vector<2x128xf32>
    %23 = math.tanh %22 : vector<2x128xf32>
    %24 = arith.negf %22 : vector<2x128xf32>
    %25 = math.exp %24 : vector<2x128xf32>
    %cst_16 = arith.constant 1.000000e+00 : f32
    %26 = vector.broadcast %cst_16 : f32 to vector<2x128xf32>
    %27 = arith.addf %26, %25 : vector<2x128xf32>
    %28 = arith.divf %26, %27 : vector<2x128xf32>
    %29 = arith.select %11, %23, %28 : vector<2x128xi1>, vector<2x128xf32>
    %30 = vector.extract_strided_slice %29 {offsets = [0, 0], sizes = [2, 32], strides = [1, 1]} : vector<2x128xf32> to vector<2x32xf32>
    %31 = vector.extract_strided_slice %29 {offsets = [0, 32], sizes = [2, 32], strides = [1, 1]} : vector<2x128xf32> to vector<2x32xf32>
    %32 = vector.extract_strided_slice %29 {offsets = [0, 64], sizes = [2, 32], strides = [1, 1]} : vector<2x128xf32> to vector<2x32xf32>
    %33 = vector.extract_strided_slice %29 {offsets = [0, 96], sizes = [2, 32], strides = [1, 1]} : vector<2x128xf32> to vector<2x32xf32>
    %34 = arith.mulf %31, %13 : vector<2x32xf32>
    %35 = arith.mulf %30, %32 : vector<2x32xf32>
    %36 = arith.addf %34, %35 : vector<2x32xf32>
    %37 = math.tanh %36 : vector<2x32xf32>
    %38 = arith.mulf %33, %37 : vector<2x32xf32>
    %cst_17 = arith.constant dense<0.000000e+00> : vector<2x128xf32>
    %39 = tpu.matmul %38, %3, %cst_17 {dimension_numbers = #tpu.dot_dimension_numbers<[1], [0], [0], [1], [0, 0, 1, 1], [], []>} : vector<2x32xf32>, vector<32x128xf32>, vector<2x128xf32> -> vector<2x128xf32>
    %40 = vector.broadcast %5 : vector<1x128xf32> to vector<2x128xf32>
    %41 = arith.addf %39, %40 : vector<2x128xf32>
    %c0_18 = arith.constant 0 : index
    %c0_19 = arith.constant 0 : index
    %c0_20 = arith.constant 0 : index
    %42 = vector.load %arg10[%c0_18, %c0_19, %c0_20] : memref<8x2x128xf32, #tpu.memory_space<vmem>>, vector<1x2x128xf32>
    %43 = vector.shape_cast %42 : vector<1x2x128xf32> to vector<2x128xf32>
    %44 = vector.shape_cast %41 : vector<2x128xf32> to vector<1x2x128xf32>
    tpu.vector_store %arg10[%c0_18, %c0_19, %c0_20], %44 {strides = array<i32>} : memref<8x2x128xf32, #tpu.memory_space<vmem>>, vector<1x2x128xf32>,
    %c1 = arith.constant 1 : index
    %c0_21 = arith.constant 0 : index
    %c0_22 = arith.constant 0 : index
    %45 = vector.load %arg0[%c1, %c0_21, %c0_22] : memref<8x2x1xf32, #tpu.memory_space<vmem>>, vector<1x2x1xf32>
    %46 = vector.shape_cast %45 : vector<1x2x1xf32> to vector<2x1xf32>
    %47 = vector.broadcast %46 : vector<2x1xf32> to vector<2x128xf32>
    %48 = vector.broadcast %0 : vector<1x128xf32> to vector<2x128xf32>
    %49 = arith.mulf %47, %48 : vector<2x128xf32>
    %50 = vector.broadcast %1 : vector<1x128xf32> to vector<2x128xf32>
    %51 = arith.addf %49, %50 : vector<2x128xf32>
    %cst_23 = arith.constant dense<0.000000e+00> : vector<2x128xf32>
    %52 = tpu.matmul %38, %2, %cst_23 {dimension_numbers = #tpu.dot_dimension_numbers<[1], [0], [0], [1], [0, 0, 1, 1], [], []>} : vector<2x32xf32>, vector<32x128xf32>, vector<2x128xf32> -> vector<2x128xf32>
    %53 = arith.addf %51, %52 : vector<2x128xf32>
    %54 = math.tanh %53 : vector<2x128xf32>
    %55 = arith.negf %53 : vector<2x128xf32>
    %56 = math.exp %55 : vector<2x128xf32>
    %cst_24 = arith.constant 1.000000e+00 : f32
    %57 = vector.broadcast %cst_24 : f32 to vector<2x128xf32>
    %58 = arith.addf %57, %56 : vector<2x128xf32>
    %59 = arith.divf %57, %58 : vector<2x128xf32>
    %60 = arith.select %11, %54, %59 : vector<2x128xi1>, vector<2x128xf32>
    %61 = vector.extract_strided_slice %60 {offsets = [0, 0], sizes = [2, 32], strides = [1, 1]} : vector<2x128xf32> to vector<2x32xf32>
    %62 = vector.extract_strided_slice %60 {offsets = [0, 32], sizes = [2, 32], strides = [1, 1]} : vector<2x128xf32> to vector<2x32xf32>
    %63 = vector.extract_strided_slice %60 {offsets = [0, 64], sizes = [2, 32], strides = [1, 1]} : vector<2x128xf32> to vector<2x32xf32>
    %64 = vector.extract_strided_slice %60 {offsets = [0, 96], sizes = [2, 32], strides = [1, 1]} : vector<2x128xf32> to vector<2x32xf32>
    %65 = arith.mulf %62, %36 : vector<2x32xf32>
    %66 = arith.mulf %61, %63 : vector<2x32xf32>
    %67 = arith.addf %65, %66 : vector<2x32xf32>
    %68 = math.tanh %67 : vector<2x32xf32>
    %69 = arith.mulf %64, %68 : vector<2x32xf32>
    %cst_25 = arith.constant dense<0.000000e+00> : vector<2x128xf32>
    %70 = tpu.matmul %69, %3, %cst_25 {dimension_numbers = #tpu.dot_dimension_numbers<[1], [0], [0], [1], [0, 0, 1, 1], [], []>} : vector<2x32xf32>, vector<32x128xf32>, vector<2x128xf32> -> vector<2x128xf32>
    %71 = vector.broadcast %5 : vector<1x128xf32> to vector<2x128xf32>
    %72 = arith.addf %70, %71 : vector<2x128xf32>
    %c1_26 = arith.constant 1 : index
    %c0_27 = arith.constant 0 : index
    %c0_28 = arith.constant 0 : index
    %73 = vector.load %arg10[%c1_26, %c0_27, %c0_28] : memref<8x2x128xf32, #tpu.memory_space<vmem>>, vector<1x2x128xf32>
    %74 = vector.shape_cast %73 : vector<1x2x128xf32> to vector<2x128xf32>
    %75 = vector.shape_cast %72 : vector<2x128xf32> to vector<1x2x128xf32>
    tpu.vector_store %arg10[%c1_26, %c0_27, %c0_28], %75 {strides = array<i32>} : memref<8x2x128xf32, #tpu.memory_space<vmem>>, vector<1x2x128xf32>,
    %c2 = arith.constant 2 : index
    %c0_29 = arith.constant 0 : index
    %c0_30 = arith.constant 0 : index
    %76 = vector.load %arg0[%c2, %c0_29, %c0_30] : memref<8x2x1xf32, #tpu.memory_space<vmem>>, vector<1x2x1xf32>
    %77 = vector.shape_cast %76 : vector<1x2x1xf32> to vector<2x1xf32>
    %78 = vector.broadcast %77 : vector<2x1xf32> to vector<2x128xf32>
    %79 = vector.broadcast %0 : vector<1x128xf32> to vector<2x128xf32>
    %80 = arith.mulf %78, %79 : vector<2x128xf32>
    %81 = vector.broadcast %1 : vector<1x128xf32> to vector<2x128xf32>
    %82 = arith.addf %80, %81 : vector<2x128xf32>
    %cst_31 = arith.constant dense<0.000000e+00> : vector<2x128xf32>
    %83 = tpu.matmul %69, %2, %cst_31 {dimension_numbers = #tpu.dot_dimension_numbers<[1], [0], [0], [1], [0, 0, 1, 1], [], []>} : vector<2x32xf32>, vector<32x128xf32>, vector<2x128xf32> -> vector<2x128xf32>
    %84 = arith.addf %82, %83 : vector<2x128xf32>
    %85 = math.tanh %84 : vector<2x128xf32>
    %86 = arith.negf %84 : vector<2x128xf32>
    %87 = math.exp %86 : vector<2x128xf32>
    %cst_32 = arith.constant 1.000000e+00 : f32
    %88 = vector.broadcast %cst_32 : f32 to vector<2x128xf32>
    %89 = arith.addf %88, %87 : vector<2x128xf32>
    %90 = arith.divf %88, %89 : vector<2x128xf32>
    %91 = arith.select %11, %85, %90 : vector<2x128xi1>, vector<2x128xf32>
    %92 = vector.extract_strided_slice %91 {offsets = [0, 0], sizes = [2, 32], strides = [1, 1]} : vector<2x128xf32> to vector<2x32xf32>
    %93 = vector.extract_strided_slice %91 {offsets = [0, 32], sizes = [2, 32], strides = [1, 1]} : vector<2x128xf32> to vector<2x32xf32>
    %94 = vector.extract_strided_slice %91 {offsets = [0, 64], sizes = [2, 32], strides = [1, 1]} : vector<2x128xf32> to vector<2x32xf32>
    %95 = vector.extract_strided_slice %91 {offsets = [0, 96], sizes = [2, 32], strides = [1, 1]} : vector<2x128xf32> to vector<2x32xf32>
    %96 = arith.mulf %93, %67 : vector<2x32xf32>
    %97 = arith.mulf %92, %94 : vector<2x32xf32>
    %98 = arith.addf %96, %97 : vector<2x32xf32>
    %99 = math.tanh %98 : vector<2x32xf32>
    %100 = arith.mulf %95, %99 : vector<2x32xf32>
    %cst_33 = arith.constant dense<0.000000e+00> : vector<2x128xf32>
    %101 = tpu.matmul %100, %3, %cst_33 {dimension_numbers = #tpu.dot_dimension_numbers<[1], [0], [0], [1], [0, 0, 1, 1], [], []>} : vector<2x32xf32>, vector<32x128xf32>, vector<2x128xf32> -> vector<2x128xf32>
    %102 = vector.broadcast %5 : vector<1x128xf32> to vector<2x128xf32>
    %103 = arith.addf %101, %102 : vector<2x128xf32>
    %c2_34 = arith.constant 2 : index
    %c0_35 = arith.constant 0 : index
    %c0_36 = arith.constant 0 : index
    %104 = vector.load %arg10[%c2_34, %c0_35, %c0_36] : memref<8x2x128xf32, #tpu.memory_space<vmem>>, vector<1x2x128xf32>
    %105 = vector.shape_cast %104 : vector<1x2x128xf32> to vector<2x128xf32>
    %106 = vector.shape_cast %103 : vector<2x128xf32> to vector<1x2x128xf32>
    tpu.vector_store %arg10[%c2_34, %c0_35, %c0_36], %106 {strides = array<i32>} : memref<8x2x128xf32, #tpu.memory_space<vmem>>, vector<1x2x128xf32>,
    %c3 = arith.constant 3 : index
    %c0_37 = arith.constant 0 : index
    %c0_38 = arith.constant 0 : index
    %107 = vector.load %arg0[%c3, %c0_37, %c0_38] : memref<8x2x1xf32, #tpu.memory_space<vmem>>, vector<1x2x1xf32>
    %108 = vector.shape_cast %107 : vector<1x2x1xf32> to vector<2x1xf32>
    %109 = vector.broadcast %108 : vector<2x1xf32> to vector<2x128xf32>
    %110 = vector.broadcast %0 : vector<1x128xf32> to vector<2x128xf32>
    %111 = arith.mulf %109, %110 : vector<2x128xf32>
    %112 = vector.broadcast %1 : vector<1x128xf32> to vector<2x128xf32>
    %113 = arith.addf %111, %112 : vector<2x128xf32>
    %cst_39 = arith.constant dense<0.000000e+00> : vector<2x128xf32>
    %114 = tpu.matmul %100, %2, %cst_39 {dimension_numbers = #tpu.dot_dimension_numbers<[1], [0], [0], [1], [0, 0, 1, 1], [], []>} : vector<2x32xf32>, vector<32x128xf32>, vector<2x128xf32> -> vector<2x128xf32>
    %115 = arith.addf %113, %114 : vector<2x128xf32>
    %116 = math.tanh %115 : vector<2x128xf32>
    %117 = arith.negf %115 : vector<2x128xf32>
    %118 = math.exp %117 : vector<2x128xf32>
    %cst_40 = arith.constant 1.000000e+00 : f32
    %119 = vector.broadcast %cst_40 : f32 to vector<2x128xf32>
    %120 = arith.addf %119, %118 : vector<2x128xf32>
    %121 = arith.divf %119, %120 : vector<2x128xf32>
    %122 = arith.select %11, %116, %121 : vector<2x128xi1>, vector<2x128xf32>
    %123 = vector.extract_strided_slice %122 {offsets = [0, 0], sizes = [2, 32], strides = [1, 1]} : vector<2x128xf32> to vector<2x32xf32>
    %124 = vector.extract_strided_slice %122 {offsets = [0, 32], sizes = [2, 32], strides = [1, 1]} : vector<2x128xf32> to vector<2x32xf32>
    %125 = vector.extract_strided_slice %122 {offsets = [0, 64], sizes = [2, 32], strides = [1, 1]} : vector<2x128xf32> to vector<2x32xf32>
    %126 = vector.extract_strided_slice %122 {offsets = [0, 96], sizes = [2, 32], strides = [1, 1]} : vector<2x128xf32> to vector<2x32xf32>
    %127 = arith.mulf %124, %98 : vector<2x32xf32>
    %128 = arith.mulf %123, %125 : vector<2x32xf32>
    %129 = arith.addf %127, %128 : vector<2x32xf32>
    %130 = math.tanh %129 : vector<2x32xf32>
    %131 = arith.mulf %126, %130 : vector<2x32xf32>
    %cst_41 = arith.constant dense<0.000000e+00> : vector<2x128xf32>
    %132 = tpu.matmul %131, %3, %cst_41 {dimension_numbers = #tpu.dot_dimension_numbers<[1], [0], [0], [1], [0, 0, 1, 1], [], []>} : vector<2x32xf32>, vector<32x128xf32>, vector<2x128xf32> -> vector<2x128xf32>
    %133 = vector.broadcast %5 : vector<1x128xf32> to vector<2x128xf32>
    %134 = arith.addf %132, %133 : vector<2x128xf32>
    %c3_42 = arith.constant 3 : index
    %c0_43 = arith.constant 0 : index
    %c0_44 = arith.constant 0 : index
    %135 = vector.load %arg10[%c3_42, %c0_43, %c0_44] : memref<8x2x128xf32, #tpu.memory_space<vmem>>, vector<1x2x128xf32>
    %136 = vector.shape_cast %135 : vector<1x2x128xf32> to vector<2x128xf32>
    %137 = vector.shape_cast %134 : vector<2x128xf32> to vector<1x2x128xf32>
    tpu.vector_store %arg10[%c3_42, %c0_43, %c0_44], %137 {strides = array<i32>} : memref<8x2x128xf32, #tpu.memory_space<vmem>>, vector<1x2x128xf32>,
    %c4 = arith.constant 4 : index
    %c0_45 = arith.constant 0 : index
    %c0_46 = arith.constant 0 : index
    %138 = vector.load %arg0[%c4, %c0_45, %c0_46] : memref<8x2x1xf32, #tpu.memory_space<vmem>>, vector<1x2x1xf32>
    %139 = vector.shape_cast %138 : vector<1x2x1xf32> to vector<2x1xf32>
    %140 = vector.broadcast %139 : vector<2x1xf32> to vector<2x128xf32>
    %141 = vector.broadcast %0 : vector<1x128xf32> to vector<2x128xf32>
    %142 = arith.mulf %140, %141 : vector<2x128xf32>
    %143 = vector.broadcast %1 : vector<1x128xf32> to vector<2x128xf32>
    %144 = arith.addf %142, %143 : vector<2x128xf32>
    %cst_47 = arith.constant dense<0.000000e+00> : vector<2x128xf32>
    %145 = tpu.matmul %131, %2, %cst_47 {dimension_numbers = #tpu.dot_dimension_numbers<[1], [0], [0], [1], [0, 0, 1, 1], [], []>} : vector<2x32xf32>, vector<32x128xf32>, vector<2x128xf32> -> vector<2x128xf32>
    %146 = arith.addf %144, %145 : vector<2x128xf32>
    %147 = math.tanh %146 : vector<2x128xf32>
    %148 = arith.negf %146 : vector<2x128xf32>
    %149 = math.exp %148 : vector<2x128xf32>
    %cst_48 = arith.constant 1.000000e+00 : f32
    %150 = vector.broadcast %cst_48 : f32 to vector<2x128xf32>
    %151 = arith.addf %150, %149 : vector<2x128xf32>
    %152 = arith.divf %150, %151 : vector<2x128xf32>
    %153 = arith.select %11, %147, %152 : vector<2x128xi1>, vector<2x128xf32>
    %154 = vector.extract_strided_slice %153 {offsets = [0, 0], sizes = [2, 32], strides = [1, 1]} : vector<2x128xf32> to vector<2x32xf32>
    %155 = vector.extract_strided_slice %153 {offsets = [0, 32], sizes = [2, 32], strides = [1, 1]} : vector<2x128xf32> to vector<2x32xf32>
    %156 = vector.extract_strided_slice %153 {offsets = [0, 64], sizes = [2, 32], strides = [1, 1]} : vector<2x128xf32> to vector<2x32xf32>
    %157 = vector.extract_strided_slice %153 {offsets = [0, 96], sizes = [2, 32], strides = [1, 1]} : vector<2x128xf32> to vector<2x32xf32>
    %158 = arith.mulf %155, %129 : vector<2x32xf32>
    %159 = arith.mulf %154, %156 : vector<2x32xf32>
    %160 = arith.addf %158, %159 : vector<2x32xf32>
    %161 = math.tanh %160 : vector<2x32xf32>
    %162 = arith.mulf %157, %161 : vector<2x32xf32>
    %cst_49 = arith.constant dense<0.000000e+00> : vector<2x128xf32>
    %163 = tpu.matmul %162, %3, %cst_49 {dimension_numbers = #tpu.dot_dimension_numbers<[1], [0], [0], [1], [0, 0, 1, 1], [], []>} : vector<2x32xf32>, vector<32x128xf32>, vector<2x128xf32> -> vector<2x128xf32>
    %164 = vector.broadcast %5 : vector<1x128xf32> to vector<2x128xf32>
    %165 = arith.addf %163, %164 : vector<2x128xf32>
    %c4_50 = arith.constant 4 : index
    %c0_51 = arith.constant 0 : index
    %c0_52 = arith.constant 0 : index
    %166 = vector.load %arg10[%c4_50, %c0_51, %c0_52] : memref<8x2x128xf32, #tpu.memory_space<vmem>>, vector<1x2x128xf32>
    %167 = vector.shape_cast %166 : vector<1x2x128xf32> to vector<2x128xf32>
    %168 = vector.shape_cast %165 : vector<2x128xf32> to vector<1x2x128xf32>
    tpu.vector_store %arg10[%c4_50, %c0_51, %c0_52], %168 {strides = array<i32>} : memref<8x2x128xf32, #tpu.memory_space<vmem>>, vector<1x2x128xf32>,
    %c5 = arith.constant 5 : index
    %c0_53 = arith.constant 0 : index
    %c0_54 = arith.constant 0 : index
    %169 = vector.load %arg0[%c5, %c0_53, %c0_54] : memref<8x2x1xf32, #tpu.memory_space<vmem>>, vector<1x2x1xf32>
    %170 = vector.shape_cast %169 : vector<1x2x1xf32> to vector<2x1xf32>
    %171 = vector.broadcast %170 : vector<2x1xf32> to vector<2x128xf32>
    %172 = vector.broadcast %0 : vector<1x128xf32> to vector<2x128xf32>
    %173 = arith.mulf %171, %172 : vector<2x128xf32>
    %174 = vector.broadcast %1 : vector<1x128xf32> to vector<2x128xf32>
    %175 = arith.addf %173, %174 : vector<2x128xf32>
    %cst_55 = arith.constant dense<0.000000e+00> : vector<2x128xf32>
    %176 = tpu.matmul %162, %2, %cst_55 {dimension_numbers = #tpu.dot_dimension_numbers<[1], [0], [0], [1], [0, 0, 1, 1], [], []>} : vector<2x32xf32>, vector<32x128xf32>, vector<2x128xf32> -> vector<2x128xf32>
    %177 = arith.addf %175, %176 : vector<2x128xf32>
    %178 = math.tanh %177 : vector<2x128xf32>
    %179 = arith.negf %177 : vector<2x128xf32>
    %180 = math.exp %179 : vector<2x128xf32>
    %cst_56 = arith.constant 1.000000e+00 : f32
    %181 = vector.broadcast %cst_56 : f32 to vector<2x128xf32>
    %182 = arith.addf %181, %180 : vector<2x128xf32>
    %183 = arith.divf %181, %182 : vector<2x128xf32>
    %184 = arith.select %11, %178, %183 : vector<2x128xi1>, vector<2x128xf32>
    %185 = vector.extract_strided_slice %184 {offsets = [0, 0], sizes = [2, 32], strides = [1, 1]} : vector<2x128xf32> to vector<2x32xf32>
    %186 = vector.extract_strided_slice %184 {offsets = [0, 32], sizes = [2, 32], strides = [1, 1]} : vector<2x128xf32> to vector<2x32xf32>
    %187 = vector.extract_strided_slice %184 {offsets = [0, 64], sizes = [2, 32], strides = [1, 1]} : vector<2x128xf32> to vector<2x32xf32>
    %188 = vector.extract_strided_slice %184 {offsets = [0, 96], sizes = [2, 32], strides = [1, 1]} : vector<2x128xf32> to vector<2x32xf32>
    %189 = arith.mulf %186, %160 : vector<2x32xf32>
    %190 = arith.mulf %185, %187 : vector<2x32xf32>
    %191 = arith.addf %189, %190 : vector<2x32xf32>
    %192 = math.tanh %191 : vector<2x32xf32>
    %193 = arith.mulf %188, %192 : vector<2x32xf32>
    %cst_57 = arith.constant dense<0.000000e+00> : vector<2x128xf32>
    %194 = tpu.matmul %193, %3, %cst_57 {dimension_numbers = #tpu.dot_dimension_numbers<[1], [0], [0], [1], [0, 0, 1, 1], [], []>} : vector<2x32xf32>, vector<32x128xf32>, vector<2x128xf32> -> vector<2x128xf32>
    %195 = vector.broadcast %5 : vector<1x128xf32> to vector<2x128xf32>
    %196 = arith.addf %194, %195 : vector<2x128xf32>
    %c5_58 = arith.constant 5 : index
    %c0_59 = arith.constant 0 : index
    %c0_60 = arith.constant 0 : index
    %197 = vector.load %arg10[%c5_58, %c0_59, %c0_60] : memref<8x2x128xf32, #tpu.memory_space<vmem>>, vector<1x2x128xf32>
    %198 = vector.shape_cast %197 : vector<1x2x128xf32> to vector<2x128xf32>
    %199 = vector.shape_cast %196 : vector<2x128xf32> to vector<1x2x128xf32>
    tpu.vector_store %arg10[%c5_58, %c0_59, %c0_60], %199 {strides = array<i32>} : memref<8x2x128xf32, #tpu.memory_space<vmem>>, vector<1x2x128xf32>,
    %c6 = arith.constant 6 : index
    %c0_61 = arith.constant 0 : index
    %c0_62 = arith.constant 0 : index
    %200 = vector.load %arg0[%c6, %c0_61, %c0_62] : memref<8x2x1xf32, #tpu.memory_space<vmem>>, vector<1x2x1xf32>
    %201 = vector.shape_cast %200 : vector<1x2x1xf32> to vector<2x1xf32>
    %202 = vector.broadcast %201 : vector<2x1xf32> to vector<2x128xf32>
    %203 = vector.broadcast %0 : vector<1x128xf32> to vector<2x128xf32>
    %204 = arith.mulf %202, %203 : vector<2x128xf32>
    %205 = vector.broadcast %1 : vector<1x128xf32> to vector<2x128xf32>
    %206 = arith.addf %204, %205 : vector<2x128xf32>
    %cst_63 = arith.constant dense<0.000000e+00> : vector<2x128xf32>
    %207 = tpu.matmul %193, %2, %cst_63 {dimension_numbers = #tpu.dot_dimension_numbers<[1], [0], [0], [1], [0, 0, 1, 1], [], []>} : vector<2x32xf32>, vector<32x128xf32>, vector<2x128xf32> -> vector<2x128xf32>
    %208 = arith.addf %206, %207 : vector<2x128xf32>
    %209 = math.tanh %208 : vector<2x128xf32>
    %210 = arith.negf %208 : vector<2x128xf32>
    %211 = math.exp %210 : vector<2x128xf32>
    %cst_64 = arith.constant 1.000000e+00 : f32
    %212 = vector.broadcast %cst_64 : f32 to vector<2x128xf32>
    %213 = arith.addf %212, %211 : vector<2x128xf32>
    %214 = arith.divf %212, %213 : vector<2x128xf32>
    %215 = arith.select %11, %209, %214 : vector<2x128xi1>, vector<2x128xf32>
    %216 = vector.extract_strided_slice %215 {offsets = [0, 0], sizes = [2, 32], strides = [1, 1]} : vector<2x128xf32> to vector<2x32xf32>
    %217 = vector.extract_strided_slice %215 {offsets = [0, 32], sizes = [2, 32], strides = [1, 1]} : vector<2x128xf32> to vector<2x32xf32>
    %218 = vector.extract_strided_slice %215 {offsets = [0, 64], sizes = [2, 32], strides = [1, 1]} : vector<2x128xf32> to vector<2x32xf32>
    %219 = vector.extract_strided_slice %215 {offsets = [0, 96], sizes = [2, 32], strides = [1, 1]} : vector<2x128xf32> to vector<2x32xf32>
    %220 = arith.mulf %217, %191 : vector<2x32xf32>
    %221 = arith.mulf %216, %218 : vector<2x32xf32>
    %222 = arith.addf %220, %221 : vector<2x32xf32>
    %223 = math.tanh %222 : vector<2x32xf32>
    %224 = arith.mulf %219, %223 : vector<2x32xf32>
    %cst_65 = arith.constant dense<0.000000e+00> : vector<2x128xf32>
    %225 = tpu.matmul %224, %3, %cst_65 {dimension_numbers = #tpu.dot_dimension_numbers<[1], [0], [0], [1], [0, 0, 1, 1], [], []>} : vector<2x32xf32>, vector<32x128xf32>, vector<2x128xf32> -> vector<2x128xf32>
    %226 = vector.broadcast %5 : vector<1x128xf32> to vector<2x128xf32>
    %227 = arith.addf %225, %226 : vector<2x128xf32>
    %c6_66 = arith.constant 6 : index
    %c0_67 = arith.constant 0 : index
    %c0_68 = arith.constant 0 : index
    %228 = vector.load %arg10[%c6_66, %c0_67, %c0_68] : memref<8x2x128xf32, #tpu.memory_space<vmem>>, vector<1x2x128xf32>
    %229 = vector.shape_cast %228 : vector<1x2x128xf32> to vector<2x128xf32>
    %230 = vector.shape_cast %227 : vector<2x128xf32> to vector<1x2x128xf32>
    tpu.vector_store %arg10[%c6_66, %c0_67, %c0_68], %230 {strides = array<i32>} : memref<8x2x128xf32, #tpu.memory_space<vmem>>, vector<1x2x128xf32>,
    %c7 = arith.constant 7 : index
    %c0_69 = arith.constant 0 : index
    %c0_70 = arith.constant 0 : index
    %231 = vector.load %arg0[%c7, %c0_69, %c0_70] : memref<8x2x1xf32, #tpu.memory_space<vmem>>, vector<1x2x1xf32>
    %232 = vector.shape_cast %231 : vector<1x2x1xf32> to vector<2x1xf32>
    %233 = vector.broadcast %232 : vector<2x1xf32> to vector<2x128xf32>
    %234 = vector.broadcast %0 : vector<1x128xf32> to vector<2x128xf32>
    %235 = arith.mulf %233, %234 : vector<2x128xf32>
    %236 = vector.broadcast %1 : vector<1x128xf32> to vector<2x128xf32>
    %237 = arith.addf %235, %236 : vector<2x128xf32>
    %cst_71 = arith.constant dense<0.000000e+00> : vector<2x128xf32>
    %238 = tpu.matmul %224, %2, %cst_71 {dimension_numbers = #tpu.dot_dimension_numbers<[1], [0], [0], [1], [0, 0, 1, 1], [], []>} : vector<2x32xf32>, vector<32x128xf32>, vector<2x128xf32> -> vector<2x128xf32>
    %239 = arith.addf %237, %238 : vector<2x128xf32>
    %240 = math.tanh %239 : vector<2x128xf32>
    %241 = arith.negf %239 : vector<2x128xf32>
    %242 = math.exp %241 : vector<2x128xf32>
    %cst_72 = arith.constant 1.000000e+00 : f32
    %243 = vector.broadcast %cst_72 : f32 to vector<2x128xf32>
    %244 = arith.addf %243, %242 : vector<2x128xf32>
    %245 = arith.divf %243, %244 : vector<2x128xf32>
    %246 = arith.select %11, %240, %245 : vector<2x128xi1>, vector<2x128xf32>
    %247 = vector.extract_strided_slice %246 {offsets = [0, 0], sizes = [2, 32], strides = [1, 1]} : vector<2x128xf32> to vector<2x32xf32>
    %248 = vector.extract_strided_slice %246 {offsets = [0, 32], sizes = [2, 32], strides = [1, 1]} : vector<2x128xf32> to vector<2x32xf32>
    %249 = vector.extract_strided_slice %246 {offsets = [0, 64], sizes = [2, 32], strides = [1, 1]} : vector<2x128xf32> to vector<2x32xf32>
    %250 = vector.extract_strided_slice %246 {offsets = [0, 96], sizes = [2, 32], strides = [1, 1]} : vector<2x128xf32> to vector<2x32xf32>
    %251 = arith.mulf %248, %222 : vector<2x32xf32>
    %252 = arith.mulf %247, %249 : vector<2x32xf32>
    %253 = arith.addf %251, %252 : vector<2x32xf32>
    %254 = math.tanh %253 : vector<2x32xf32>
    %255 = arith.mulf %250, %254 : vector<2x32xf32>
    %cst_73 = arith.constant dense<0.000000e+00> : vector<2x128xf32>
    %256 = tpu.matmul %255, %3, %cst_73 {dimension_numbers = #tpu.dot_dimension_numbers<[1], [0], [0], [1], [0, 0, 1, 1], [], []>} : vector<2x32xf32>, vector<32x128xf32>, vector<2x128xf32> -> vector<2x128xf32>
    %257 = vector.broadcast %5 : vector<1x128xf32> to vector<2x128xf32>
    %258 = arith.addf %256, %257 : vector<2x128xf32>
    %c7_74 = arith.constant 7 : index
    %c0_75 = arith.constant 0 : index
    %c0_76 = arith.constant 0 : index
    %259 = vector.load %arg10[%c7_74, %c0_75, %c0_76] : memref<8x2x128xf32, #tpu.memory_space<vmem>>, vector<1x2x128xf32>
    %260 = vector.shape_cast %259 : vector<1x2x128xf32> to vector<2x128xf32>
    %261 = vector.shape_cast %258 : vector<2x128xf32> to vector<1x2x128xf32>
    tpu.vector_store %arg10[%c7_74, %c0_75, %c0_76], %261 {strides = array<i32>} : memref<8x2x128xf32, #tpu.memory_space<vmem>>, vector<1x2x128xf32>,
    %cst_77 = arith.constant 0.000000e+00 : f32
    %262 = vector.broadcast %cst_77 : f32 to vector<2x32xf32>
    %cst_78 = arith.constant 0.000000e+00 : f32
    %263 = vector.broadcast %cst_78 : f32 to vector<2x32xf32>
    %c0_79 = arith.constant 0 : index
    %c0_80 = arith.constant 0 : index
    %c0_81 = arith.constant 0 : index
    %264 = vector.load %arg10[%c0_79, %c0_80, %c0_81] : memref<8x2x128xf32, #tpu.memory_space<vmem>>, vector<1x2x128xf32>
    %265 = vector.shape_cast %264 : vector<1x2x128xf32> to vector<2x128xf32>
    %cst_82 = arith.constant dense<0.000000e+00> : vector<2x128xf32>
    %266 = tpu.matmul %262, %4, %cst_82 {dimension_numbers = #tpu.dot_dimension_numbers<[1], [0], [0], [1], [0, 0, 1, 1], [], []>} : vector<2x32xf32>, vector<32x128xf32>, vector<2x128xf32> -> vector<2x128xf32>
    %267 = arith.addf %265, %266 : vector<2x128xf32>
    %268 = math.tanh %267 : vector<2x128xf32>
    %269 = arith.negf %267 : vector<2x128xf32>
    %270 = math.exp %269 : vector<2x128xf32>
    %cst_83 = arith.constant 1.000000e+00 : f32
    %271 = vector.broadcast %cst_83 : f32 to vector<2x128xf32>
    %272 = arith.addf %271, %270 : vector<2x128xf32>
    %273 = arith.divf %271, %272 : vector<2x128xf32>
    %274 = arith.select %11, %268, %273 : vector<2x128xi1>, vector<2x128xf32>
    %275 = vector.extract_strided_slice %274 {offsets = [0, 0], sizes = [2, 32], strides = [1, 1]} : vector<2x128xf32> to vector<2x32xf32>
    %276 = vector.extract_strided_slice %274 {offsets = [0, 32], sizes = [2, 32], strides = [1, 1]} : vector<2x128xf32> to vector<2x32xf32>
    %277 = vector.extract_strided_slice %274 {offsets = [0, 64], sizes = [2, 32], strides = [1, 1]} : vector<2x128xf32> to vector<2x32xf32>
    %278 = vector.extract_strided_slice %274 {offsets = [0, 96], sizes = [2, 32], strides = [1, 1]} : vector<2x128xf32> to vector<2x32xf32>
    %279 = arith.mulf %276, %263 : vector<2x32xf32>
    %280 = arith.mulf %275, %277 : vector<2x32xf32>
    %281 = arith.addf %279, %280 : vector<2x32xf32>
    %282 = math.tanh %281 : vector<2x32xf32>
    %283 = arith.mulf %278, %282 : vector<2x32xf32>
    %c0_84 = arith.constant 0 : index
    %c0_85 = arith.constant 0 : index
    %c0_86 = arith.constant 0 : index
    %284 = vector.load %arg11[%c0_84, %c0_85, %c0_86] : memref<8x2x32xf32, #tpu.memory_space<vmem>>, vector<1x2x32xf32>
    %285 = vector.shape_cast %284 : vector<1x2x32xf32> to vector<2x32xf32>
    %286 = vector.shape_cast %283 : vector<2x32xf32> to vector<1x2x32xf32>
    tpu.vector_store %arg11[%c0_84, %c0_85, %c0_86], %286 {strides = array<i32>} : memref<8x2x32xf32, #tpu.memory_space<vmem>>, vector<1x2x32xf32>,
    %c1_87 = arith.constant 1 : index
    %c0_88 = arith.constant 0 : index
    %c0_89 = arith.constant 0 : index
    %287 = vector.load %arg10[%c1_87, %c0_88, %c0_89] : memref<8x2x128xf32, #tpu.memory_space<vmem>>, vector<1x2x128xf32>
    %288 = vector.shape_cast %287 : vector<1x2x128xf32> to vector<2x128xf32>
    %cst_90 = arith.constant dense<0.000000e+00> : vector<2x128xf32>
    %289 = tpu.matmul %283, %4, %cst_90 {dimension_numbers = #tpu.dot_dimension_numbers<[1], [0], [0], [1], [0, 0, 1, 1], [], []>} : vector<2x32xf32>, vector<32x128xf32>, vector<2x128xf32> -> vector<2x128xf32>
    %290 = arith.addf %288, %289 : vector<2x128xf32>
    %291 = math.tanh %290 : vector<2x128xf32>
    %292 = arith.negf %290 : vector<2x128xf32>
    %293 = math.exp %292 : vector<2x128xf32>
    %cst_91 = arith.constant 1.000000e+00 : f32
    %294 = vector.broadcast %cst_91 : f32 to vector<2x128xf32>
    %295 = arith.addf %294, %293 : vector<2x128xf32>
    %296 = arith.divf %294, %295 : vector<2x128xf32>
    %297 = arith.select %11, %291, %296 : vector<2x128xi1>, vector<2x128xf32>
    %298 = vector.extract_strided_slice %297 {offsets = [0, 0], sizes = [2, 32], strides = [1, 1]} : vector<2x128xf32> to vector<2x32xf32>
    %299 = vector.extract_strided_slice %297 {offsets = [0, 32], sizes = [2, 32], strides = [1, 1]} : vector<2x128xf32> to vector<2x32xf32>
    %300 = vector.extract_strided_slice %297 {offsets = [0, 64], sizes = [2, 32], strides = [1, 1]} : vector<2x128xf32> to vector<2x32xf32>
    %301 = vector.extract_strided_slice %297 {offsets = [0, 96], sizes = [2, 32], strides = [1, 1]} : vector<2x128xf32> to vector<2x32xf32>
    %302 = arith.mulf %299, %281 : vector<2x32xf32>
    %303 = arith.mulf %298, %300 : vector<2x32xf32>
    %304 = arith.addf %302, %303 : vector<2x32xf32>
    %305 = math.tanh %304 : vector<2x32xf32>
    %306 = arith.mulf %301, %305 : vector<2x32xf32>
    %c1_92 = arith.constant 1 : index
    %c0_93 = arith.constant 0 : index
    %c0_94 = arith.constant 0 : index
    %307 = vector.load %arg11[%c1_92, %c0_93, %c0_94] : memref<8x2x32xf32, #tpu.memory_space<vmem>>, vector<1x2x32xf32>
    %308 = vector.shape_cast %307 : vector<1x2x32xf32> to vector<2x32xf32>
    %309 = vector.shape_cast %306 : vector<2x32xf32> to vector<1x2x32xf32>
    tpu.vector_store %arg11[%c1_92, %c0_93, %c0_94], %309 {strides = array<i32>} : memref<8x2x32xf32, #tpu.memory_space<vmem>>, vector<1x2x32xf32>,
    %c2_95 = arith.constant 2 : index
    %c0_96 = arith.constant 0 : index
    %c0_97 = arith.constant 0 : index
    %310 = vector.load %arg10[%c2_95, %c0_96, %c0_97] : memref<8x2x128xf32, #tpu.memory_space<vmem>>, vector<1x2x128xf32>
    %311 = vector.shape_cast %310 : vector<1x2x128xf32> to vector<2x128xf32>
    %cst_98 = arith.constant dense<0.000000e+00> : vector<2x128xf32>
    %312 = tpu.matmul %306, %4, %cst_98 {dimension_numbers = #tpu.dot_dimension_numbers<[1], [0], [0], [1], [0, 0, 1, 1], [], []>} : vector<2x32xf32>, vector<32x128xf32>, vector<2x128xf32> -> vector<2x128xf32>
    %313 = arith.addf %311, %312 : vector<2x128xf32>
    %314 = math.tanh %313 : vector<2x128xf32>
    %315 = arith.negf %313 : vector<2x128xf32>
    %316 = math.exp %315 : vector<2x128xf32>
    %cst_99 = arith.constant 1.000000e+00 : f32
    %317 = vector.broadcast %cst_99 : f32 to vector<2x128xf32>
    %318 = arith.addf %317, %316 : vector<2x128xf32>
    %319 = arith.divf %317, %318 : vector<2x128xf32>
    %320 = arith.select %11, %314, %319 : vector<2x128xi1>, vector<2x128xf32>
    %321 = vector.extract_strided_slice %320 {offsets = [0, 0], sizes = [2, 32], strides = [1, 1]} : vector<2x128xf32> to vector<2x32xf32>
    %322 = vector.extract_strided_slice %320 {offsets = [0, 32], sizes = [2, 32], strides = [1, 1]} : vector<2x128xf32> to vector<2x32xf32>
    %323 = vector.extract_strided_slice %320 {offsets = [0, 64], sizes = [2, 32], strides = [1, 1]} : vector<2x128xf32> to vector<2x32xf32>
    %324 = vector.extract_strided_slice %320 {offsets = [0, 96], sizes = [2, 32], strides = [1, 1]} : vector<2x128xf32> to vector<2x32xf32>
    %325 = arith.mulf %322, %304 : vector<2x32xf32>
    %326 = arith.mulf %321, %323 : vector<2x32xf32>
    %327 = arith.addf %325, %326 : vector<2x32xf32>
    %328 = math.tanh %327 : vector<2x32xf32>
    %329 = arith.mulf %324, %328 : vector<2x32xf32>
    %c2_100 = arith.constant 2 : index
    %c0_101 = arith.constant 0 : index
    %c0_102 = arith.constant 0 : index
    %330 = vector.load %arg11[%c2_100, %c0_101, %c0_102] : memref<8x2x32xf32, #tpu.memory_space<vmem>>, vector<1x2x32xf32>
    %331 = vector.shape_cast %330 : vector<1x2x32xf32> to vector<2x32xf32>
    %332 = vector.shape_cast %329 : vector<2x32xf32> to vector<1x2x32xf32>
    tpu.vector_store %arg11[%c2_100, %c0_101, %c0_102], %332 {strides = array<i32>} : memref<8x2x32xf32, #tpu.memory_space<vmem>>, vector<1x2x32xf32>,
    %c3_103 = arith.constant 3 : index
    %c0_104 = arith.constant 0 : index
    %c0_105 = arith.constant 0 : index
    %333 = vector.load %arg10[%c3_103, %c0_104, %c0_105] : memref<8x2x128xf32, #tpu.memory_space<vmem>>, vector<1x2x128xf32>
    %334 = vector.shape_cast %333 : vector<1x2x128xf32> to vector<2x128xf32>
    %cst_106 = arith.constant dense<0.000000e+00> : vector<2x128xf32>
    %335 = tpu.matmul %329, %4, %cst_106 {dimension_numbers = #tpu.dot_dimension_numbers<[1], [0], [0], [1], [0, 0, 1, 1], [], []>} : vector<2x32xf32>, vector<32x128xf32>, vector<2x128xf32> -> vector<2x128xf32>
    %336 = arith.addf %334, %335 : vector<2x128xf32>
    %337 = math.tanh %336 : vector<2x128xf32>
    %338 = arith.negf %336 : vector<2x128xf32>
    %339 = math.exp %338 : vector<2x128xf32>
    %cst_107 = arith.constant 1.000000e+00 : f32
    %340 = vector.broadcast %cst_107 : f32 to vector<2x128xf32>
    %341 = arith.addf %340, %339 : vector<2x128xf32>
    %342 = arith.divf %340, %341 : vector<2x128xf32>
    %343 = arith.select %11, %337, %342 : vector<2x128xi1>, vector<2x128xf32>
    %344 = vector.extract_strided_slice %343 {offsets = [0, 0], sizes = [2, 32], strides = [1, 1]} : vector<2x128xf32> to vector<2x32xf32>
    %345 = vector.extract_strided_slice %343 {offsets = [0, 32], sizes = [2, 32], strides = [1, 1]} : vector<2x128xf32> to vector<2x32xf32>
    %346 = vector.extract_strided_slice %343 {offsets = [0, 64], sizes = [2, 32], strides = [1, 1]} : vector<2x128xf32> to vector<2x32xf32>
    %347 = vector.extract_strided_slice %343 {offsets = [0, 96], sizes = [2, 32], strides = [1, 1]} : vector<2x128xf32> to vector<2x32xf32>
    %348 = arith.mulf %345, %327 : vector<2x32xf32>
    %349 = arith.mulf %344, %346 : vector<2x32xf32>
    %350 = arith.addf %348, %349 : vector<2x32xf32>
    %351 = math.tanh %350 : vector<2x32xf32>
    %352 = arith.mulf %347, %351 : vector<2x32xf32>
    %c3_108 = arith.constant 3 : index
    %c0_109 = arith.constant 0 : index
    %c0_110 = arith.constant 0 : index
    %353 = vector.load %arg11[%c3_108, %c0_109, %c0_110] : memref<8x2x32xf32, #tpu.memory_space<vmem>>, vector<1x2x32xf32>
    %354 = vector.shape_cast %353 : vector<1x2x32xf32> to vector<2x32xf32>
    %355 = vector.shape_cast %352 : vector<2x32xf32> to vector<1x2x32xf32>
    tpu.vector_store %arg11[%c3_108, %c0_109, %c0_110], %355 {strides = array<i32>} : memref<8x2x32xf32, #tpu.memory_space<vmem>>, vector<1x2x32xf32>,
    %c4_111 = arith.constant 4 : index
    %c0_112 = arith.constant 0 : index
    %c0_113 = arith.constant 0 : index
    %356 = vector.load %arg10[%c4_111, %c0_112, %c0_113] : memref<8x2x128xf32, #tpu.memory_space<vmem>>, vector<1x2x128xf32>
    %357 = vector.shape_cast %356 : vector<1x2x128xf32> to vector<2x128xf32>
    %cst_114 = arith.constant dense<0.000000e+00> : vector<2x128xf32>
    %358 = tpu.matmul %352, %4, %cst_114 {dimension_numbers = #tpu.dot_dimension_numbers<[1], [0], [0], [1], [0, 0, 1, 1], [], []>} : vector<2x32xf32>, vector<32x128xf32>, vector<2x128xf32> -> vector<2x128xf32>
    %359 = arith.addf %357, %358 : vector<2x128xf32>
    %360 = math.tanh %359 : vector<2x128xf32>
    %361 = arith.negf %359 : vector<2x128xf32>
    %362 = math.exp %361 : vector<2x128xf32>
    %cst_115 = arith.constant 1.000000e+00 : f32
    %363 = vector.broadcast %cst_115 : f32 to vector<2x128xf32>
    %364 = arith.addf %363, %362 : vector<2x128xf32>
    %365 = arith.divf %363, %364 : vector<2x128xf32>
    %366 = arith.select %11, %360, %365 : vector<2x128xi1>, vector<2x128xf32>
    %367 = vector.extract_strided_slice %366 {offsets = [0, 0], sizes = [2, 32], strides = [1, 1]} : vector<2x128xf32> to vector<2x32xf32>
    %368 = vector.extract_strided_slice %366 {offsets = [0, 32], sizes = [2, 32], strides = [1, 1]} : vector<2x128xf32> to vector<2x32xf32>
    %369 = vector.extract_strided_slice %366 {offsets = [0, 64], sizes = [2, 32], strides = [1, 1]} : vector<2x128xf32> to vector<2x32xf32>
    %370 = vector.extract_strided_slice %366 {offsets = [0, 96], sizes = [2, 32], strides = [1, 1]} : vector<2x128xf32> to vector<2x32xf32>
    %371 = arith.mulf %368, %350 : vector<2x32xf32>
    %372 = arith.mulf %367, %369 : vector<2x32xf32>
    %373 = arith.addf %371, %372 : vector<2x32xf32>
    %374 = math.tanh %373 : vector<2x32xf32>
    %375 = arith.mulf %370, %374 : vector<2x32xf32>
    %c4_116 = arith.constant 4 : index
    %c0_117 = arith.constant 0 : index
    %c0_118 = arith.constant 0 : index
    %376 = vector.load %arg11[%c4_116, %c0_117, %c0_118] : memref<8x2x32xf32, #tpu.memory_space<vmem>>, vector<1x2x32xf32>
    %377 = vector.shape_cast %376 : vector<1x2x32xf32> to vector<2x32xf32>
    %378 = vector.shape_cast %375 : vector<2x32xf32> to vector<1x2x32xf32>
    tpu.vector_store %arg11[%c4_116, %c0_117, %c0_118], %378 {strides = array<i32>} : memref<8x2x32xf32, #tpu.memory_space<vmem>>, vector<1x2x32xf32>,
    %c5_119 = arith.constant 5 : index
    %c0_120 = arith.constant 0 : index
    %c0_121 = arith.constant 0 : index
    %379 = vector.load %arg10[%c5_119, %c0_120, %c0_121] : memref<8x2x128xf32, #tpu.memory_space<vmem>>, vector<1x2x128xf32>
    %380 = vector.shape_cast %379 : vector<1x2x128xf32> to vector<2x128xf32>
    %cst_122 = arith.constant dense<0.000000e+00> : vector<2x128xf32>
    %381 = tpu.matmul %375, %4, %cst_122 {dimension_numbers = #tpu.dot_dimension_numbers<[1], [0], [0], [1], [0, 0, 1, 1], [], []>} : vector<2x32xf32>, vector<32x128xf32>, vector<2x128xf32> -> vector<2x128xf32>
    %382 = arith.addf %380, %381 : vector<2x128xf32>
    %383 = math.tanh %382 : vector<2x128xf32>
    %384 = arith.negf %382 : vector<2x128xf32>
    %385 = math.exp %384 : vector<2x128xf32>
    %cst_123 = arith.constant 1.000000e+00 : f32
    %386 = vector.broadcast %cst_123 : f32 to vector<2x128xf32>
    %387 = arith.addf %386, %385 : vector<2x128xf32>
    %388 = arith.divf %386, %387 : vector<2x128xf32>
    %389 = arith.select %11, %383, %388 : vector<2x128xi1>, vector<2x128xf32>
    %390 = vector.extract_strided_slice %389 {offsets = [0, 0], sizes = [2, 32], strides = [1, 1]} : vector<2x128xf32> to vector<2x32xf32>
    %391 = vector.extract_strided_slice %389 {offsets = [0, 32], sizes = [2, 32], strides = [1, 1]} : vector<2x128xf32> to vector<2x32xf32>
    %392 = vector.extract_strided_slice %389 {offsets = [0, 64], sizes = [2, 32], strides = [1, 1]} : vector<2x128xf32> to vector<2x32xf32>
    %393 = vector.extract_strided_slice %389 {offsets = [0, 96], sizes = [2, 32], strides = [1, 1]} : vector<2x128xf32> to vector<2x32xf32>
    %394 = arith.mulf %391, %373 : vector<2x32xf32>
    %395 = arith.mulf %390, %392 : vector<2x32xf32>
    %396 = arith.addf %394, %395 : vector<2x32xf32>
    %397 = math.tanh %396 : vector<2x32xf32>
    %398 = arith.mulf %393, %397 : vector<2x32xf32>
    %c5_124 = arith.constant 5 : index
    %c0_125 = arith.constant 0 : index
    %c0_126 = arith.constant 0 : index
    %399 = vector.load %arg11[%c5_124, %c0_125, %c0_126] : memref<8x2x32xf32, #tpu.memory_space<vmem>>, vector<1x2x32xf32>
    %400 = vector.shape_cast %399 : vector<1x2x32xf32> to vector<2x32xf32>
    %401 = vector.shape_cast %398 : vector<2x32xf32> to vector<1x2x32xf32>
    tpu.vector_store %arg11[%c5_124, %c0_125, %c0_126], %401 {strides = array<i32>} : memref<8x2x32xf32, #tpu.memory_space<vmem>>, vector<1x2x32xf32>,
    %c6_127 = arith.constant 6 : index
    %c0_128 = arith.constant 0 : index
    %c0_129 = arith.constant 0 : index
    %402 = vector.load %arg10[%c6_127, %c0_128, %c0_129] : memref<8x2x128xf32, #tpu.memory_space<vmem>>, vector<1x2x128xf32>
    %403 = vector.shape_cast %402 : vector<1x2x128xf32> to vector<2x128xf32>
    %cst_130 = arith.constant dense<0.000000e+00> : vector<2x128xf32>
    %404 = tpu.matmul %398, %4, %cst_130 {dimension_numbers = #tpu.dot_dimension_numbers<[1], [0], [0], [1], [0, 0, 1, 1], [], []>} : vector<2x32xf32>, vector<32x128xf32>, vector<2x128xf32> -> vector<2x128xf32>
    %405 = arith.addf %403, %404 : vector<2x128xf32>
    %406 = math.tanh %405 : vector<2x128xf32>
    %407 = arith.negf %405 : vector<2x128xf32>
    %408 = math.exp %407 : vector<2x128xf32>
    %cst_131 = arith.constant 1.000000e+00 : f32
    %409 = vector.broadcast %cst_131 : f32 to vector<2x128xf32>
    %410 = arith.addf %409, %408 : vector<2x128xf32>
    %411 = arith.divf %409, %410 : vector<2x128xf32>
    %412 = arith.select %11, %406, %411 : vector<2x128xi1>, vector<2x128xf32>
    %413 = vector.extract_strided_slice %412 {offsets = [0, 0], sizes = [2, 32], strides = [1, 1]} : vector<2x128xf32> to vector<2x32xf32>
    %414 = vector.extract_strided_slice %412 {offsets = [0, 32], sizes = [2, 32], strides = [1, 1]} : vector<2x128xf32> to vector<2x32xf32>
    %415 = vector.extract_strided_slice %412 {offsets = [0, 64], sizes = [2, 32], strides = [1, 1]} : vector<2x128xf32> to vector<2x32xf32>
    %416 = vector.extract_strided_slice %412 {offsets = [0, 96], sizes = [2, 32], strides = [1, 1]} : vector<2x128xf32> to vector<2x32xf32>
    %417 = arith.mulf %414, %396 : vector<2x32xf32>
    %418 = arith.mulf %413, %415 : vector<2x32xf32>
    %419 = arith.addf %417, %418 : vector<2x32xf32>
    %420 = math.tanh %419 : vector<2x32xf32>
    %421 = arith.mulf %416, %420 : vector<2x32xf32>
    %c6_132 = arith.constant 6 : index
    %c0_133 = arith.constant 0 : index
    %c0_134 = arith.constant 0 : index
    %422 = vector.load %arg11[%c6_132, %c0_133, %c0_134] : memref<8x2x32xf32, #tpu.memory_space<vmem>>, vector<1x2x32xf32>
    %423 = vector.shape_cast %422 : vector<1x2x32xf32> to vector<2x32xf32>
    %424 = vector.shape_cast %421 : vector<2x32xf32> to vector<1x2x32xf32>
    tpu.vector_store %arg11[%c6_132, %c0_133, %c0_134], %424 {strides = array<i32>} : memref<8x2x32xf32, #tpu.memory_space<vmem>>, vector<1x2x32xf32>,
    %c7_135 = arith.constant 7 : index
    %c0_136 = arith.constant 0 : index
    %c0_137 = arith.constant 0 : index
    %425 = vector.load %arg10[%c7_135, %c0_136, %c0_137] : memref<8x2x128xf32, #tpu.memory_space<vmem>>, vector<1x2x128xf32>
    %426 = vector.shape_cast %425 : vector<1x2x128xf32> to vector<2x128xf32>
    %cst_138 = arith.constant dense<0.000000e+00> : vector<2x128xf32>
    %427 = tpu.matmul %421, %4, %cst_138 {dimension_numbers = #tpu.dot_dimension_numbers<[1], [0], [0], [1], [0, 0, 1, 1], [], []>} : vector<2x32xf32>, vector<32x128xf32>, vector<2x128xf32> -> vector<2x128xf32>
    %428 = arith.addf %426, %427 : vector<2x128xf32>
    %429 = math.tanh %428 : vector<2x128xf32>
    %430 = arith.negf %428 : vector<2x128xf32>
    %431 = math.exp %430 : vector<2x128xf32>
    %cst_139 = arith.constant 1.000000e+00 : f32
    %432 = vector.broadcast %cst_139 : f32 to vector<2x128xf32>
    %433 = arith.addf %432, %431 : vector<2x128xf32>
    %434 = arith.divf %432, %433 : vector<2x128xf32>
    %435 = arith.select %11, %429, %434 : vector<2x128xi1>, vector<2x128xf32>
    %436 = vector.extract_strided_slice %435 {offsets = [0, 0], sizes = [2, 32], strides = [1, 1]} : vector<2x128xf32> to vector<2x32xf32>
    %437 = vector.extract_strided_slice %435 {offsets = [0, 32], sizes = [2, 32], strides = [1, 1]} : vector<2x128xf32> to vector<2x32xf32>
    %438 = vector.extract_strided_slice %435 {offsets = [0, 64], sizes = [2, 32], strides = [1, 1]} : vector<2x128xf32> to vector<2x32xf32>
    %439 = vector.extract_strided_slice %435 {offsets = [0, 96], sizes = [2, 32], strides = [1, 1]} : vector<2x128xf32> to vector<2x32xf32>
    %440 = arith.mulf %437, %419 : vector<2x32xf32>
    %441 = arith.mulf %436, %438 : vector<2x32xf32>
    %442 = arith.addf %440, %441 : vector<2x32xf32>
    %443 = math.tanh %442 : vector<2x32xf32>
    %444 = arith.mulf %439, %443 : vector<2x32xf32>
    %c7_140 = arith.constant 7 : index
    %c0_141 = arith.constant 0 : index
    %c0_142 = arith.constant 0 : index
    %445 = vector.load %arg11[%c7_140, %c0_141, %c0_142] : memref<8x2x32xf32, #tpu.memory_space<vmem>>, vector<1x2x32xf32>
    %446 = vector.shape_cast %445 : vector<1x2x32xf32> to vector<2x32xf32>
    %447 = vector.shape_cast %444 : vector<2x32xf32> to vector<1x2x32xf32>
    tpu.vector_store %arg11[%c7_140, %c0_141, %c0_142], %447 {strides = array<i32>} : memref<8x2x32xf32, #tpu.memory_space<vmem>>, vector<1x2x32xf32>,
    %c0_143 = arith.constant 0 : index
    %c0_144 = arith.constant 0 : index
    %c0_145 = arith.constant 0 : index
    %448 = vector.load %arg11[%c0_143, %c0_144, %c0_145] : memref<8x2x32xf32, #tpu.memory_space<vmem>>, vector<8x2x32xf32>
    %cst_146 = arith.constant 0.000000e+00 : f32
    %449 = vector.broadcast %cst_146 : f32 to vector<8x2x32xf32>
    %450 = arith.maximumf %448, %449 : vector<8x2x32xf32>
    %c0_147 = arith.constant 0 : index
    %c0_148 = arith.constant 0 : index
    %451 = vector.load %arg7[%c0_147, %c0_148] : memref<1x32xf32, #tpu.memory_space<vmem>>, vector<1x32xf32>
    %452 = vector.shape_cast %451 : vector<1x32xf32> to vector<1x1x32xf32>
    %453 = vector.broadcast %452 : vector<1x1x32xf32> to vector<8x2x32xf32>
    %454 = arith.mulf %450, %453 : vector<8x2x32xf32>
    %cst_149 = arith.constant dense<0.000000e+00> : vector<8x2xf32>
    %455 = vector.multi_reduction <add>, %454, %cst_149 [2] : vector<8x2x32xf32> to vector<8x2xf32>
    %c0_150 = arith.constant 0 : index
    %456 = memref.load %arg8[%c0_150] : memref<1xf32, #tpu.memory_space<smem>>
    %457 = vector.broadcast %456 : f32 to vector<8x2xf32>
    %458 = arith.addf %455, %457 : vector<8x2xf32>
    %c0_151 = arith.constant 0 : index
    %c0_152 = arith.constant 0 : index
    %459 = vector.load %arg9[%c0_151, %c0_152] : memref<8x2xf32, #tpu.memory_space<vmem>>, vector<8x2xf32>
    tpu.vector_store %arg9[%c0_151, %c0_152], %458 {strides = array<i32>} : memref<8x2xf32, #tpu.memory_space<vmem>>, vector<8x2xf32>,
    return
  }
}

</mosaic_0001>

<bundles_post_ra>
// kernel: simple_lstm_forward.1
= control target key start
LH: loop header
LB: loop body
LE: loop exit
PB: predicated region body
PF: predicated region fallthrough
CT: control target
= control target key end

     0   :  { %15 = vsyncpa [#allocation6], 0  ;;  %s3770_s0 = inlined_call_operand.vmem [shape: f32[8,2,1], index: 0, kind: input, shape index: {}]   ;;  %s3771_s1 = inlined_call_operand.vmem [shape: f32[1,128], index: 1, kind: input, shape index: {}]   ;;  %s3772_s2 = inlined_call_operand.vmem [shape: f32[32,128], index: 2, kind: input, shape index: {}]   ;;  %s3773_s3 = inlined_call_operand.vmem [shape: f32[1,128], index: 3, kind: input, shape index: {}]   ;;  %s3774_s4 = inlined_call_operand.vmem [shape: f32[32,128], index: 4, kind: input, shape index: {}]   ;;  %s3775_s5 = inlined_call_operand.hbm [shape: f32[32,128], index: 5, kind: input, shape index: {}]   ;;  %s3776_s6 = inlined_call_operand.vmem [shape: f32[1,128], index: 6, kind: input, shape index: {}]   ;;  %s3777_s7 = inlined_call_operand.hbm [shape: f32[1,32], index: 7, kind: input, shape index: {}]   ;;  %s3778_s8 = inlined_call_operand.<no memory space> [shape: f32[1], index: 8, kind: input, shape index: {}]   ;;  %s3779_s9 = inlined_call_operand.vmem [shape: f32[8,2], index: 9, kind: output, shape index: {}]  }
   0x1   :  { %16 = vsyncpa [#allocation8], 0  ;;  %s3286_s30 = smov [#allocation5]   ;;  %s3238_s13 = scalar_lea.hbm %s3775_s5, 512 }
   0x2   :  { %s32_s10 = sshll.u32 %s3286_s30, 4  ;;  %p3239_p0 = scmp.ne.s32.totalorder %s3775_s5, %s3238_s13  ;;  %s33_s10 = int_to_ptr.vmem [resolvable:$true] %s32_s10 }
   0x3   :  { %p3242_p1 = scmp.lt.u32.totalorder %s3238_s13, %s3775_s5 }
   0x5   :  { %p3244_p2 = pnand %p3242_p1, %p3239_p0 }
   0x7   :  { %3247 = shalt.err (!%p3244_p2)
}
   0x8   :  { %s3248_s18 = scalar_lea.vmem %s33_s10, 512  ;;  %p3253_p4 = scmp.lt.s32.totalorder %s33_s10, %s33_s10 }
   0x9   :  { %p3249_p3 = scmp.ne.s32.totalorder %s33_s10, %s3248_s18  ;;  %p3254_p5 = scmp.lt.s32.totalorder %s3248_s18, %s3248_s18 }
   0xb   :  { %p3255_p6 = por %p3254_p5, %p3253_p4 }
   0xd   :  { %p3256_p7 = pnand %p3255_p6, %p3249_p3 }
   0xf   :  { %3259 = shalt.err (!%p3256_p7)
}
  0x10   :  { %s3287_s19 = smov 128   ;;  %s3288_s20 = smov 8  }
  0x11   :  { %38 = dma.hbm_to_vmem [thread:$0]  %s3775_s5, 512, %s33_s10, [#allocation6], %s3287_s19, %s3287_s19, %s3288_s20  }
  0x12   :  { %s3289_s23 = smov [#allocation7]   ;;  %s3260_s27 = scalar_lea.hbm %s3777_s7, 16 }
  0x13   :  { %s47_s24 = sshll.u32 %s3289_s23, 4  ;;  %p3261_p8 = scmp.ne.s32.totalorder %s3777_s7, %s3260_s27  ;;  %s48_s24 = int_to_ptr.vmem [resolvable:$true] %s47_s24 }
  0x14   :  { %p3264_p9 = scmp.lt.u32.totalorder %s3260_s27, %s3777_s7 }
  0x16   :  { %p3266_p10 = pnand %p3264_p9, %p3261_p8 }
  0x18   :  { %3269 = shalt.err (!%p3266_p10)
}
  0x19   :  { %s3270_s12 = scalar_lea.vmem %s48_s24, 16  ;;  %s3274_s5 = scalar_lea.vmem %s48_s24, 32 }
  0x1a   :  { %p3271_p11 = scmp.ne.s32.totalorder %s48_s24, %s3270_s12  ;;  %p3275_p12 = scmp.lt.s32.totalorder %s48_s24, %s48_s24 }
  0x1b   :  { %p3276_p13 = scmp.lt.s32.totalorder %s3274_s5, %s3270_s12 }
  0x1d   :  { %p3277_p0 = por %p3276_p13, %p3275_p12 }
  0x1f   :  { %p3278_p1 = pnand %p3277_p0, %p3271_p11 }
  0x21   :  { %3281 = shalt.err (!%p3278_p1)
}
  0x22   :  { %50 = dma.hbm_to_vmem [thread:$0]  %s3777_s7, 16, %s48_s24, [#allocation8]  }
  0x23   :  { %3282 = dma.done.wait [#allocation6], 512  }
  0x24   :  { %3283 = vsyncadd [#allocation6], 4294966784 }
  0x25   :  { %3284 = dma.done.wait [#allocation8], 16  }
  0x26   :  { %3285 = vsyncadd [#allocation8], 4294967280  ;;  %v3290_v0 = vmov 0.0|0.0   ;;  %vm3291_vm0 = vmmov 0   ;;  %v3292_v1 = vmov 0.0   ;;  %v3293_v2 = vmov 0  }
  0x27   :  { %2954 = vmatprep.subr.bf16.mxu0 %v3290_v0  ;;  %2698 = vmatprep.mubr.msk.f32.mxu0 %vm3291_vm0, %v3292_v1  ;;  %v61_v3 = vld [vmem:[%s3772_s2] sm:$0xff]  ;;  %v62_v4 = vld [vmem:[%s3772_s2 + $0x8] sm:$0xff]  ;;  %v63_v5 = vld [vmem:[%s3772_s2 + $0x10] sm:$0xff]  ;;  %v74_v20 = vlaneseq  ;;  %vm99_vm4 = vcmask 261120   ;;  %vm1656_vm5 = vcmask 254976   ;;  %vm2498_vm6 = vcmask 1041409  }
  0x28   :  { %3108 = vset.pattern.permute.xlu0 %v3293_v2  ;;  %2960 = vmatprep.subr.bf16.mxu1 %v3290_v0  ;;  %v3385_v6 = vpack.c.bf16 %v62_v4, %v61_v3  ;;  %v64_v7 = vld [vmem:[%s3772_s2 + $0x18] sm:$0xff]  ;;  %v79_v8 = vld [vmem:[%s3770_s0] sm:$0x3]  ;;  %v66_v33 = vld [vmem:[%s3774_s4 + $0x8] sm:$0xff]  ;;  %vm2500_vm7 = vcmask 1042434   ;;  %vm2502_vm8 = vcmask 1043459  }
  0x29   :  { %2709 = vmatprep.mubr.msk.f32.mxu1 %vm3291_vm0, %v3292_v1  ;;  %3109 = vset.pattern.permute.xlu1 %v3293_v2  ;;  %v3394_v9 = vpack.c.bf16 %v64_v7, %v63_v5  ;;  %v3409_v11 = vld [vmem:[%s3771_s1] ss:$0 sm:$0xff]  ;;  %v3419_v22 = vand.u32 127, %v74_v20  ;;  %s3294_s1 = smov 64   ;;  %v67_v34 = vld [vmem:[%s3774_s4 + $0x10] sm:$0xff]  ;;  %v68_v36 = vld [vmem:[%s3774_s4 + $0x18] sm:$0xff] }
  0x2a   :  { %82 = vperm.xlu0 %3108, %v79_v8   ;;  %2956 = vmatpush3.bf16.msra.mxu0 %v3385_v6  ;;  %v3415_v13 = vld [vmem:[%s3773_s3] ss:$0 sm:$0xff]  ;;  %s3295_s3 = smov 32   ;;  %v3446_v37 = vpack.c.bf16 %v68_v36, %v67_v34  ;;  %v2526_v39 = vld [vmem:[%s3770_s0 + $0x2] sm:$0x3]  ;;  %vm2504_vm9 = vcmask 1044484  }
  0x2b   :  { %2957 = vmatprep.subr.bf16.mxu0 %v3290_v0  ;;  %vm76_vm1 = vcmp.ge.s32.totalorder %v3419_v22, 64  ;;  %vm77_vm2 = vcmp.lt.s32.totalorder %v3419_v22, 96  ;;  %v65_v32 = vld [vmem:[%s3774_s4] sm:$0xff]  ;;  %vm2506_vm10 = vcmask 1045509   ;;  %vm2508_vm11 = vcmask 1046534  }
  0x2c   :  { %vm3423_vm3 = vmand %vm76_vm1, %vm77_vm2  ;;  %v3440_v35 = vpack.c.bf16 %v66_v33, %v65_v32  ;;  %v3475_v46 = vld [vmem:[%s3776_s6] ss:$0 sm:$0xff]  ;;  %v2530_v3 = vld [vmem:[%s3770_s0 + $0x4] sm:$0x3]  ;;  %vm2510_vm12 = vcmask 1047559   ;;  %vm2513_vm13 = vcmask 15360  }
  0x2d   :  { %v2534_v36 = vld [vmem:[%s3770_s0 + $0x6] sm:$0x3] }
  0x2e   :  { %2959 = vmatpush3.bf16.msra.mxu0 %v3394_v9  ;;  %2962 = vmatpush3.bf16.msra.mxu1 %v3440_v35 }
  0x2f   :  { %2966 = vmatprep.subr.bf16.mxu0 %v3290_v0  ;;  %2963 = vmatprep.subr.bf16.mxu1 %v3290_v0 }
  0x31   :  { %2699 = vmatmul.mubr.f32.vlgmr.msra.gmra.mrb[0].mxu0 %v3292_v1 }
  0x32   :  { %2968 = vmatpush3.bf16.msra.mxu0 %v3385_v6  ;;  %2720 = vmatprep.mubr.msk.f32.mxu0 %vm3291_vm0, %v3292_v1 }
  0x33   :  { %2969 = vmatprep.subr.bf16.mxu0 %v3290_v0  ;;  %2965 = vmatpush3.bf16.msra.mxu1 %v3446_v37 }
  0x34   :  { %2972 = vmatprep.subr.bf16.mxu1 %v3290_v0 }
  0x36   :  { %2971 = vmatpush3.bf16.msra.mxu0 %v3394_v9 }
  0x37   :  { %2978 = vmatprep.subr.bf16.mxu0 %v3290_v0 }
  0xa9   :  { %v83_v10 = vpop.permute.xlu0 %82 }
  0xaa   :  { %v91_v12 = vmul.f32 %v3409_v11, %v83_v10 }
  0xac   :  { %v98_v14 = vadd.f32 %v3415_v13, %v91_v12 }
 0x104   :  { %v169_v15 = vpop.f32.mrb[0].mxu0 }
 0x105   :  { %v173_v16 = vadd.f32 %v169_v15, %v98_v14  ;;  %v2700_v17 = vpop.f32.mrb[1].mxu0 }
 0x107   :  { %v2523_v18 = vmul.f32 -1.442695, %v173_v16 }
 0x109   :  { %3110 = vpow2.f32 %v2523_v18 }
 0x10a   :  { %3112 = vtanh.f32 %v173_v16 }
 0x113   :  { %v3111_v19 = vpop.eup %3110 }
 0x114   :  { %v178_v21 = vadd.f32 1.0, %v3111_v19  ;;  %v3113_v24 = vpop.eup %3112 }
 0x116   :  { %3114 = vrcp.f32 %v178_v21 }
 0x120   :  { %v3115_v25 = vpop.eup %3114 }
 0x121   :  { %v181_v26 = vsel %vm3423_vm3, %v3113_v24, %v3115_v25 }
 0x122   :  { %184 = vrot.lane.b32.xlu0 %v181_v26, %s3294_s1  ;;  %v182_v29 = vmul.f32 0.0, %v181_v26 }
 0x194   :  { %v185_v27 = vpop.permute.xlu0 %184 }
 0x195   :  { %v187_v28 = vmul.f32 %v185_v27, %v181_v26 }
 0x197   :  { %189 = vrot.lane.b32.xlu1 %v187_v28, %s3295_s3 }
 0x209   :  { %v190_v30 = vpop.permute.xlu1 %189 }
 0x20a   :  { %v192_v31 = vadd.f32 %v190_v30, %v182_v29 }
 0x20c   :  { %3116 = vtanh.f32 %v192_v31 }
 0x216   :  { %v3117_v38 = vpop.eup %3116 }
 0x217   :  { %195 = vrot.lane.b32.xlu1 %v3117_v38, %s3294_s1 }
 0x21b   :  { %285 = vperm.xlu1 %3109, %v2526_v39  }
 0x289   :  { %v196_v40 = vpop.permute.xlu1 %195 }
 0x28a   :  { %v198_v41 = vmul.f32 %v196_v40, %v181_v26 }
 0x28c   :  { %206 = vrot.lane.b32.xlu0 %v198_v41, %s3295_s3 }
 0x29a   :  { %v286_v43 = vpop.permute.xlu1 %285 }
 0x29b   :  { %v288_v44 = vmul.f32 %v3409_v11, %v286_v43 }
 0x29d   :  { %v289_v45 = vadd.f32 %v3415_v13, %v288_v44 }
 0x2fe   :  { %v207_v42 = vpop.permute.xlu0 %206 }
 0x2ff   :  { %2710 = vmatmul.mubr.msk.f32.vlgmr.msra.gmra.mrb[0].mxu1 %vm99_vm4, %v207_v42  ;;  %2721 = vmatmul.mubr.msk.f32.vlgmr.msra.gmra.mrb[2].mxu0 %vm99_vm4, %v207_v42 }
 0x300   :  { %2974 = vmatpush3.bf16.msra.mxu1 %v3440_v35  ;;  %2980 = vmatpush3.bf16.msra.mxu0 %v3385_v6 }
 0x301   :  { %2975 = vmatprep.subr.bf16.mxu1 %v3290_v0  ;;  %2981 = vmatprep.subr.bf16.mxu0 %v3290_v0 }
 0x302   :  { %2731 = vmatprep.mubr.msk.f32.mxu1 %vm3291_vm0, %v3292_v1  ;;  %2742 = vmatprep.mubr.msk.f32.mxu0 %vm3291_vm0, %v3292_v1 }
 0x304   :  { %2977 = vmatpush3.bf16.msra.mxu1 %v3446_v37  ;;  %2983 = vmatpush3.bf16.msra.mxu0 %v3394_v9 }
 0x305   :  { %2984 = vmatprep.subr.bf16.mxu1 %v3290_v0  ;;  %2990 = vmatprep.subr.bf16.mxu0 %v3290_v0 }
 0x3d2   :  { %v276_v47 = vpop.f32.mrb[0].mxu1  ;;  %v356_v48 = vpop.f32.mrb[2].mxu0 }
 0x3d3   :  { %v277_v49 = vadd.f32 %v3475_v46, %v276_v47  ;;  %v360_v50 = vadd.f32 %v356_v48, %v289_v45  ;;  %v2711_v51 = vpop.f32.mrb[1].mxu1  ;;  %v2722_v52 = vpop.f32.mrb[3].mxu0 }
 0x3d5   :  { %280 = vst [vmem:[#allocation2] sm:$0x3] %v277_v49  ;;  %v2528_v53 = vmul.f32 -1.442695, %v360_v50 }
 0x3d7   :  { %3118 = vpow2.f32 %v2528_v53 }
 0x3d8   :  { %3120 = vtanh.f32 %v360_v50 }
 0x3e1   :  { %v3119_v54 = vpop.eup %3118 }
 0x3e2   :  { %v365_v55 = vadd.f32 1.0, %v3119_v54  ;;  %v3121_v56 = vpop.eup %3120 }
 0x3e4   :  { %3122 = vrcp.f32 %v365_v55 }
 0x3ee   :  { %v3123_v57 = vpop.eup %3122 }
 0x3ef   :  { %v368_v58 = vsel %vm3423_vm3, %v3121_v56, %v3123_v57 }
 0x3f0   :  { %371 = vrot.lane.b32.xlu0 %v368_v58, %s3294_s1  ;;  %v369_v61 = vmul.f32 %v368_v58, %v192_v31 }
 0x462   :  { %v372_v59 = vpop.permute.xlu0 %371 }
 0x463   :  { %v374_v60 = vmul.f32 %v372_v59, %v368_v58 }
 0x465   :  { %376 = vrot.lane.b32.xlu1 %v374_v60, %s3295_s3 }
 0x4d7   :  { %v377_v62 = vpop.permute.xlu1 %376 }
 0x4d8   :  { %v379_v63 = vadd.f32 %v377_v62, %v369_v61 }
 0x4da   :  { %3124 = vtanh.f32 %v379_v63 }
 0x4e4   :  { %v3125_v2 = vpop.eup %3124 }
 0x4e5   :  { %382 = vrot.lane.b32.xlu0 %v3125_v2, %s3294_s1 }
 0x4e9   :  { %467 = vperm.xlu0 %3108, %v2530_v3  }
 0x557   :  { %v383_v4 = vpop.permute.xlu0 %382 }
 0x558   :  { %v385_v5 = vmul.f32 %v383_v4, %v368_v58 }
 0x55a   :  { %387 = vrot.lane.b32.xlu1 %v385_v5, %s3295_s3 }
 0x568   :  { %v468_v8 = vpop.permute.xlu0 %467 }
 0x569   :  { %v470_v10 = vmul.f32 %v3409_v11, %v468_v8 }
 0x56b   :  { %v471_v12 = vadd.f32 %v3415_v13, %v470_v10 }
 0x5cc   :  { %v388_v7 = vpop.permute.xlu1 %387 }
 0x5cd   :  { %2732 = vmatmul.mubr.msk.f32.vlgmr.msra.gmra.mrb[2].mxu1 %vm99_vm4, %v388_v7  ;;  %2743 = vmatmul.mubr.msk.f32.vlgmr.msra.gmra.mrb[4].mxu0 %vm99_vm4, %v388_v7 }
 0x5ce   :  { %2986 = vmatpush3.bf16.msra.mxu1 %v3440_v35  ;;  %2992 = vmatpush3.bf16.msra.mxu0 %v3385_v6 }
 0x5cf   :  { %2987 = vmatprep.subr.bf16.mxu1 %v3290_v0  ;;  %2993 = vmatprep.subr.bf16.mxu0 %v3290_v0 }
 0x5d0   :  { %2753 = vmatprep.mubr.msk.f32.mxu1 %vm3291_vm0, %v3292_v1  ;;  %2764 = vmatprep.mubr.msk.f32.mxu0 %vm3291_vm0, %v3292_v1 }
 0x5d2   :  { %2989 = vmatpush3.bf16.msra.mxu1 %v3446_v37  ;;  %2995 = vmatpush3.bf16.msra.mxu0 %v3394_v9 }
 0x5d3   :  { %2996 = vmatprep.subr.bf16.mxu1 %v3290_v0  ;;  %3002 = vmatprep.subr.bf16.mxu0 %v3290_v0 }
 0x6a0   :  { %v457_v14 = vpop.f32.mrb[2].mxu1  ;;  %v538_v15 = vpop.f32.mrb[4].mxu0 }
 0x6a1   :  { %v458_v16 = vadd.f32 %v3475_v46, %v457_v14  ;;  %v542_v17 = vadd.f32 %v538_v15, %v471_v12  ;;  %v2733_v18 = vpop.f32.mrb[3].mxu1  ;;  %v2744_v19 = vpop.f32.mrb[5].mxu0 }
 0x6a3   :  { %462 = vst [vmem:[#allocation2 + $0x2] sm:$0x3] %v458_v16  ;;  %v2532_v21 = vmul.f32 -1.442695, %v542_v17 }
 0x6a5   :  { %3126 = vpow2.f32 %v2532_v21 }
 0x6a6   :  { %3128 = vtanh.f32 %v542_v17 }
 0x6af   :  { %v3127_v24 = vpop.eup %3126 }
 0x6b0   :  { %v547_v25 = vadd.f32 1.0, %v3127_v24  ;;  %v3129_v26 = vpop.eup %3128 }
 0x6b2   :  { %3130 = vrcp.f32 %v547_v25 }
 0x6bc   :  { %v3131_v27 = vpop.eup %3130 }
 0x6bd   :  { %v550_v28 = vsel %vm3423_vm3, %v3129_v26, %v3131_v27 }
 0x6be   :  { %553 = vrot.lane.b32.xlu1 %v550_v28, %s3294_s1  ;;  %v551_v31 = vmul.f32 %v550_v28, %v379_v63  ;;  %v2538_v63 = vld [vmem:[%s3770_s0 + $0x8] sm:$0x3] }
 0x730   :  { %v554_v29 = vpop.permute.xlu1 %553 }
 0x731   :  { %v556_v30 = vmul.f32 %v554_v29, %v550_v28 }
 0x733   :  { %558 = vrot.lane.b32.xlu0 %v556_v30, %s3295_s3 }
 0x7a5   :  { %v559_v32 = vpop.permute.xlu0 %558 }
 0x7a6   :  { %v561_v33 = vadd.f32 %v559_v32, %v551_v31 }
 0x7a8   :  { %3132 = vtanh.f32 %v561_v33 }
 0x7b2   :  { %v3133_v34 = vpop.eup %3132 }
 0x7b3   :  { %564 = vrot.lane.b32.xlu1 %v3133_v34, %s3294_s1 }
 0x7b7   :  { %649 = vperm.xlu1 %3109, %v2534_v36  }
 0x825   :  { %v565_v38 = vpop.permute.xlu1 %564 }
 0x826   :  { %v567_v39 = vmul.f32 %v565_v38, %v550_v28 }
 0x828   :  { %569 = vrot.lane.b32.xlu0 %v567_v39, %s3295_s3 }
 0x836   :  { %v650_v41 = vpop.permute.xlu1 %649 }
 0x837   :  { %v652_v42 = vmul.f32 %v3409_v11, %v650_v41 }
 0x839   :  { %v653_v43 = vadd.f32 %v3415_v13, %v652_v42 }
 0x89a   :  { %v570_v40 = vpop.permute.xlu0 %569 }
 0x89b   :  { %2754 = vmatmul.mubr.msk.f32.vlgmr.msra.gmra.mrb[4].mxu1 %vm99_vm4, %v570_v40  ;;  %2765 = vmatmul.mubr.msk.f32.vlgmr.msra.gmra.mrb[6].mxu0 %vm99_vm4, %v570_v40 }
 0x89c   :  { %2998 = vmatpush3.bf16.msra.mxu1 %v3440_v35  ;;  %3004 = vmatpush3.bf16.msra.mxu0 %v3385_v6 }
 0x89d   :  { %2999 = vmatprep.subr.bf16.mxu1 %v3290_v0  ;;  %3005 = vmatprep.subr.bf16.mxu0 %v3290_v0 }
 0x89e   :  { %2775 = vmatprep.mubr.msk.f32.mxu1 %vm3291_vm0, %v3292_v1  ;;  %2786 = vmatprep.mubr.msk.f32.mxu0 %vm3291_vm0, %v3292_v1 }
 0x8a0   :  { %3001 = vmatpush3.bf16.msra.mxu1 %v3446_v37  ;;  %3007 = vmatpush3.bf16.msra.mxu0 %v3394_v9 }
 0x8a1   :  { %3008 = vmatprep.subr.bf16.mxu1 %v3290_v0  ;;  %3014 = vmatprep.subr.bf16.mxu0 %v3290_v0 }
 0x96e   :  { %v639_v44 = vpop.f32.mrb[4].mxu1  ;;  %v720_v45 = vpop.f32.mrb[6].mxu0 }
 0x96f   :  { %v640_v47 = vadd.f32 %v3475_v46, %v639_v44  ;;  %v724_v48 = vadd.f32 %v720_v45, %v653_v43  ;;  %v2755_v49 = vpop.f32.mrb[5].mxu1  ;;  %v2766_v50 = vpop.f32.mrb[7].mxu0 }
 0x971   :  { %644 = vst [vmem:[#allocation2 + $0x4] sm:$0x3] %v640_v47  ;;  %v2536_v51 = vmul.f32 -1.442695, %v724_v48 }
 0x973   :  { %3134 = vpow2.f32 %v2536_v51 }
 0x974   :  { %3136 = vtanh.f32 %v724_v48 }
 0x97d   :  { %v3135_v52 = vpop.eup %3134 }
 0x97e   :  { %v729_v53 = vadd.f32 1.0, %v3135_v52  ;;  %v3137_v54 = vpop.eup %3136 }
 0x980   :  { %3138 = vrcp.f32 %v729_v53 }
 0x98a   :  { %v3139_v55 = vpop.eup %3138 }
 0x98b   :  { %v732_v56 = vsel %vm3423_vm3, %v3137_v54, %v3139_v55 }
 0x98c   :  { %735 = vrot.lane.b32.xlu0 %v732_v56, %s3294_s1  ;;  %v733_v59 = vmul.f32 %v732_v56, %v561_v33  ;;  %v2542_v33 = vld [vmem:[%s3770_s0 + $0xa] sm:$0x3] }
 0x9fe   :  { %v736_v57 = vpop.permute.xlu0 %735 }
 0x9ff   :  { %v738_v58 = vmul.f32 %v736_v57, %v732_v56 }
 0xa01   :  { %740 = vrot.lane.b32.xlu1 %v738_v58, %s3295_s3 }
 0xa73   :  { %v741_v60 = vpop.permute.xlu1 %740 }
 0xa74   :  { %v743_v61 = vadd.f32 %v741_v60, %v733_v59 }
 0xa76   :  { %3140 = vtanh.f32 %v743_v61 }
 0xa80   :  { %v3141_v62 = vpop.eup %3140 }
 0xa81   :  { %746 = vrot.lane.b32.xlu0 %v3141_v62, %s3294_s1 }
 0xa85   :  { %831 = vperm.xlu0 %3108, %v2538_v63  }
 0xaf3   :  { %v747_v2 = vpop.permute.xlu0 %746 }
 0xaf4   :  { %v749_v3 = vmul.f32 %v747_v2, %v732_v56 }
 0xaf6   :  { %751 = vrot.lane.b32.xlu1 %v749_v3, %s3295_s3 }
 0xb04   :  { %v832_v5 = vpop.permute.xlu0 %831 }
 0xb05   :  { %v834_v7 = vmul.f32 %v3409_v11, %v832_v5 }
 0xb07   :  { %v835_v8 = vadd.f32 %v3415_v13, %v834_v7 }
 0xb68   :  { %v752_v4 = vpop.permute.xlu1 %751 }
 0xb69   :  { %2776 = vmatmul.mubr.msk.f32.vlgmr.msra.gmra.mrb[6].mxu1 %vm99_vm4, %v752_v4  ;;  %2787 = vmatmul.mubr.msk.f32.vlgmr.msra.gmra.mrb[8].mxu0 %vm99_vm4, %v752_v4 }
 0xb6a   :  { %3010 = vmatpush3.bf16.msra.mxu1 %v3440_v35  ;;  %3016 = vmatpush3.bf16.msra.mxu0 %v3385_v6 }
 0xb6b   :  { %3011 = vmatprep.subr.bf16.mxu1 %v3290_v0  ;;  %3017 = vmatprep.subr.bf16.mxu0 %v3290_v0 }
 0xb6c   :  { %2797 = vmatprep.mubr.msk.f32.mxu1 %vm3291_vm0, %v3292_v1  ;;  %2808 = vmatprep.mubr.msk.f32.mxu0 %vm3291_vm0, %v3292_v1 }
 0xb6e   :  { %3013 = vmatpush3.bf16.msra.mxu1 %v3446_v37  ;;  %3019 = vmatpush3.bf16.msra.mxu0 %v3394_v9 }
 0xb6f   :  { %3020 = vmatprep.subr.bf16.mxu1 %v3290_v0  ;;  %3026 = vmatprep.subr.bf16.mxu0 %v3290_v0 }
 0xc3c   :  { %v821_v10 = vpop.f32.mrb[6].mxu1  ;;  %v902_v12 = vpop.f32.mrb[8].mxu0 }
 0xc3d   :  { %v822_v14 = vadd.f32 %v3475_v46, %v821_v10  ;;  %v906_v15 = vadd.f32 %v902_v12, %v835_v8  ;;  %v2777_v16 = vpop.f32.mrb[7].mxu1  ;;  %v2788_v17 = vpop.f32.mrb[9].mxu0 }
 0xc3f   :  { %826 = vst [vmem:[#allocation2 + $0x6] sm:$0x3] %v822_v14  ;;  %v2540_v18 = vmul.f32 -1.442695, %v906_v15 }
 0xc41   :  { %3142 = vpow2.f32 %v2540_v18 }
 0xc42   :  { %3144 = vtanh.f32 %v906_v15 }
 0xc4b   :  { %v3143_v19 = vpop.eup %3142 }
 0xc4c   :  { %v911_v21 = vadd.f32 1.0, %v3143_v19  ;;  %v3145_v24 = vpop.eup %3144 }
 0xc4e   :  { %3146 = vrcp.f32 %v911_v21 }
 0xc58   :  { %v3147_v25 = vpop.eup %3146 }
 0xc59   :  { %v914_v26 = vsel %vm3423_vm3, %v3145_v24, %v3147_v25 }
 0xc5a   :  { %917 = vrot.lane.b32.xlu1 %v914_v26, %s3294_s1  ;;  %v915_v29 = vmul.f32 %v914_v26, %v743_v61  ;;  %v2546_v61 = vld [vmem:[%s3770_s0 + $0xc] sm:$0x3] }
 0xccc   :  { %v918_v27 = vpop.permute.xlu1 %917 }
 0xccd   :  { %v920_v28 = vmul.f32 %v918_v27, %v914_v26 }
 0xccf   :  { %922 = vrot.lane.b32.xlu0 %v920_v28, %s3295_s3 }
 0xd41   :  { %v923_v30 = vpop.permute.xlu0 %922 }
 0xd42   :  { %v925_v31 = vadd.f32 %v923_v30, %v915_v29  ;;  %v2550_v29 = vld [vmem:[%s3770_s0 + $0xe] sm:$0x3] }
 0xd44   :  { %3148 = vtanh.f32 %v925_v31 }
 0xd4e   :  { %v3149_v32 = vpop.eup %3148 }
 0xd4f   :  { %928 = vrot.lane.b32.xlu1 %v3149_v32, %s3294_s1  ;;  %v69_v32 = vld [vmem:[#allocation5] sm:$0xff] }
 0xd53   :  { %1013 = vperm.xlu1 %3109, %v2542_v33   ;;  %v70_v33 = vld [vmem:[#allocation5 + $0x8] sm:$0xff] }
 0xdc1   :  { %v929_v34 = vpop.permute.xlu1 %928 }
 0xdc2   :  { %v931_v36 = vmul.f32 %v929_v34, %v914_v26  ;;  %v3620_v34 = vpack.c.bf16 %v70_v33, %v69_v32 }
 0xdc4   :  { %933 = vrot.lane.b32.xlu0 %v931_v36, %s3295_s3  ;;  %v71_v36 = vld [vmem:[#allocation5 + $0x10] sm:$0xff] }
 0xdd2   :  { %v1014_v39 = vpop.permute.xlu1 %1013 }
 0xdd3   :  { %v1016_v40 = vmul.f32 %v3409_v11, %v1014_v39 }
 0xdd5   :  { %v1017_v41 = vadd.f32 %v3415_v13, %v1016_v40 }
 0xe36   :  { %v934_v38 = vpop.permute.xlu0 %933 }
 0xe37   :  { %2798 = vmatmul.mubr.msk.f32.vlgmr.msra.gmra.mrb[8].mxu1 %vm99_vm4, %v934_v38  ;;  %2809 = vmatmul.mubr.msk.f32.vlgmr.msra.gmra.mrb[10].mxu0 %vm99_vm4, %v934_v38  ;;  %v72_v38 = vld [vmem:[#allocation5 + $0x18] sm:$0xff] }
 0xe38   :  { %3022 = vmatpush3.bf16.msra.mxu1 %v3440_v35  ;;  %3028 = vmatpush3.bf16.msra.mxu0 %v3385_v6  ;;  %v3625_v40 = vpack.c.bf16 %v72_v38, %v71_v36 }
 0xe39   :  { %3023 = vmatprep.subr.bf16.mxu1 %v3290_v0  ;;  %3029 = vmatprep.subr.bf16.mxu0 %v3290_v0 }
 0xe3a   :  { %2819 = vmatprep.mubr.msk.f32.mxu1 %vm3291_vm0, %v3292_v1  ;;  %2830 = vmatprep.mubr.msk.f32.mxu0 %vm3291_vm0, %v3292_v1 }
 0xe3c   :  { %3025 = vmatpush3.bf16.msra.mxu1 %v3446_v37  ;;  %3031 = vmatpush3.bf16.msra.mxu0 %v3394_v9 }
 0xe3d   :  { %3038 = vmatprep.subr.bf16.mxu0 %v3290_v0  ;;  %3032 = vmatprep.subr.bf16.mxu1 %v3290_v0 }
 0xf0a   :  { %v1003_v42 = vpop.f32.mrb[8].mxu1  ;;  %v1084_v43 = vpop.f32.mrb[10].mxu0 }
 0xf0b   :  { %v1004_v44 = vadd.f32 %v3475_v46, %v1003_v42  ;;  %v1088_v45 = vadd.f32 %v1084_v43, %v1017_v41  ;;  %v2799_v47 = vpop.f32.mrb[9].mxu1  ;;  %v2810_v48 = vpop.f32.mrb[11].mxu0 }
 0xf0d   :  { %1008 = vst [vmem:[#allocation2 + $0x8] sm:$0x3] %v1004_v44  ;;  %v2544_v49 = vmul.f32 -1.442695, %v1088_v45 }
 0xf0f   :  { %3150 = vpow2.f32 %v2544_v49 }
 0xf10   :  { %3152 = vtanh.f32 %v1088_v45 }
 0xf19   :  { %v3151_v50 = vpop.eup %3150 }
 0xf1a   :  { %v1093_v51 = vadd.f32 1.0, %v3151_v50  ;;  %v3153_v52 = vpop.eup %3152  ;;  %v1555_v50 = vld [vmem:[#allocation2] sm:$0x3] }
 0xf1c   :  { %3154 = vrcp.f32 %v1093_v51 }
 0xf26   :  { %v3155_v53 = vpop.eup %3154 }
 0xf27   :  { %v1096_v54 = vsel %vm3423_vm3, %v3153_v52, %v3155_v53 }
 0xf28   :  { %1099 = vrot.lane.b32.xlu0 %v1096_v54, %s3294_s1  ;;  %v1097_v57 = vmul.f32 %v1096_v54, %v925_v31 }
 0xf9a   :  { %v1100_v55 = vpop.permute.xlu0 %1099 }
 0xf9b   :  { %v1102_v56 = vmul.f32 %v1100_v55, %v1096_v54 }
 0xf9d   :  { %1104 = vrot.lane.b32.xlu1 %v1102_v56, %s3295_s3 }
0x100f   :  { %v1105_v58 = vpop.permute.xlu1 %1104 }
0x1010   :  { %v1107_v59 = vadd.f32 %v1105_v58, %v1097_v57 }
0x1012   :  { %3156 = vtanh.f32 %v1107_v59 }
0x101c   :  { %v3157_v60 = vpop.eup %3156 }
0x101d   :  { %1110 = vrot.lane.b32.xlu0 %v3157_v60, %s3294_s1 }
0x1021   :  { %1195 = vperm.xlu0 %3108, %v2546_v61  }
0x108f   :  { %v1111_v62 = vpop.permute.xlu0 %1110 }
0x1090   :  { %v1113_v63 = vmul.f32 %v1111_v62, %v1096_v54 }
0x1092   :  { %1115 = vrot.lane.b32.xlu1 %v1113_v63, %s3295_s3 }
0x1104   :  { %v1116_v2 = vpop.permute.xlu1 %1115 }
0x1105   :  { %2820 = vmatmul.mubr.msk.f32.vlgmr.msra.gmra.mrb[10].mxu1 %vm99_vm4, %v1116_v2  ;;  %2831 = vmatmul.mubr.msk.f32.vlgmr.msra.gmra.mrb[12].mxu0 %vm99_vm4, %v1116_v2 }
0x1106   :  { %3040 = vmatpush3.bf16.msra.mxu0 %v3385_v6  ;;  %3034 = vmatpush3.bf16.msra.mxu1 %v3440_v35  ;;  %v1196_v6 = vpop.permute.xlu0 %1195 }
0x1107   :  { %3041 = vmatprep.subr.bf16.mxu0 %v3290_v0  ;;  %3035 = vmatprep.subr.bf16.mxu1 %v3290_v0  ;;  %v1198_v3 = vmul.f32 %v3409_v11, %v1196_v6 }
0x1108   :  { %2841 = vmatprep.mubr.msk.f32.mxu1 %vm3291_vm0, %v3292_v1  ;;  %2852 = vmatprep.mubr.msk.f32.mxu0 %vm3291_vm0, %v3292_v1 }
0x1109   :  { %v1199_v4 = vadd.f32 %v3415_v13, %v1198_v3 }
0x110a   :  { %3043 = vmatpush3.bf16.msra.mxu0 %v3394_v9  ;;  %3037 = vmatpush3.bf16.msra.mxu1 %v3446_v37 }
0x110b   :  { %3050 = vmatprep.subr.bf16.mxu0 %v3290_v0  ;;  %3044 = vmatprep.subr.bf16.mxu1 %v3290_v0 }
0x11d8   :  { %v1185_v5 = vpop.f32.mrb[10].mxu1  ;;  %v1266_v7 = vpop.f32.mrb[12].mxu0 }
0x11d9   :  { %v1186_v8 = vadd.f32 %v3475_v46, %v1185_v5  ;;  %v1270_v10 = vadd.f32 %v1266_v7, %v1199_v4  ;;  %v2821_v12 = vpop.f32.mrb[11].mxu1  ;;  %v2832_v14 = vpop.f32.mrb[13].mxu0 }
0x11db   :  { %1190 = vst [vmem:[#allocation2 + $0xa] sm:$0x3] %v1186_v8  ;;  %v2548_v9 = vmul.f32 -1.442695, %v1270_v10 }
0x11dd   :  { %3158 = vpow2.f32 %v2548_v9 }
0x11de   :  { %3160 = vtanh.f32 %v1270_v10 }
0x11e7   :  { %v3159_v15 = vpop.eup %3158 }
0x11e8   :  { %v1275_v16 = vadd.f32 1.0, %v3159_v15  ;;  %v3161_v17 = vpop.eup %3160 }
0x11ea   :  { %3162 = vrcp.f32 %v1275_v16 }
0x11f4   :  { %v3163_v18 = vpop.eup %3162 }
0x11f5   :  { %v1278_v19 = vsel %vm3423_vm3, %v3161_v17, %v3163_v18 }
0x11f6   :  { %1281 = vrot.lane.b32.xlu1 %v1278_v19, %s3294_s1  ;;  %v1279_v25 = vmul.f32 %v1278_v19, %v1107_v59 }
0x1268   :  { %v1282_v21 = vpop.permute.xlu1 %1281 }
0x1269   :  { %v1284_v24 = vmul.f32 %v1282_v21, %v1278_v19 }
0x126b   :  { %1286 = vrot.lane.b32.xlu0 %v1284_v24, %s3295_s3 }
0x12dd   :  { %v1287_v26 = vpop.permute.xlu0 %1286 }
0x12de   :  { %v3612_v27 = vadd.f32 %v1287_v26, %v1279_v25 }
0x12e0   :  { %3164 = vtanh.f32 %v3612_v27 }
0x12ea   :  { %v3165_v28 = vpop.eup %3164 }
0x12eb   :  { %1292 = vrot.lane.b32.xlu1 %v3165_v28, %s3294_s1 }
0x12ef   :  { %1377 = vperm.xlu1 %3109, %v2550_v29  }
0x135d   :  { %v1293_v30 = vpop.permute.xlu1 %1292 }
0x135e   :  { %v1295_v31 = vmul.f32 %v1293_v30, %v1278_v19 }
0x1360   :  { %1297 = vrot.lane.b32.xlu0 %v1295_v31, %s3295_s3 }
0x13d2   :  { %v1298_v39 = vpop.permute.xlu0 %1297 }
0x13d3   :  { %2842 = vmatmul.mubr.msk.f32.vlgmr.msra.gmra.mrb[12].mxu1 %vm99_vm4, %v1298_v39  ;;  %2853 = vmatmul.mubr.msk.f32.vlgmr.msra.gmra.mrb[14].mxu0 %vm99_vm4, %v1298_v39 }
0x13d4   :  { %3052 = vmatpush3.bf16.msra.mxu0 %v3620_v34  ;;  %2874 = vmatprep.mubr.msk.f32.mxu0 %vm3291_vm0, %v3292_v1 }
0x13d5   :  { %3053 = vmatprep.subr.bf16.mxu0 %v3290_v0  ;;  %3046 = vmatpush3.bf16.msra.mxu1 %v3440_v35  ;;  %v1378_v35 = vpop.permute.xlu1 %1377 }
0x13d6   :  { %3047 = vmatprep.subr.bf16.mxu1 %v3290_v0  ;;  %2863 = vmatprep.mubr.msk.f32.mxu1 %vm3291_vm0, %v3292_v1 }
0x13d8   :  { %3055 = vmatpush3.bf16.msra.mxu0 %v3625_v40 }
0x13d9   :  { %3049 = vmatpush3.bf16.msra.mxu1 %v3446_v37  ;;  %3062 = vmatprep.subr.bf16.mxu0 %v3290_v0  ;;  %v1380_v37 = vmul.f32 %v3409_v11, %v1378_v35 }
0x13da   :  { %3056 = vmatprep.subr.bf16.mxu1 %v3290_v0 }
0x13db   :  { %2875 = vmatmul.mubr.f32.vlgmr.msra.gmra.mrb[16].mxu0 %v3292_v1  ;;  %v1381_v41 = vadd.f32 %v3415_v13, %v1380_v37 }
0x13dc   :  { %3064 = vmatpush3.bf16.msra.mxu0 %v3620_v34  ;;  %2896 = vmatprep.mubr.msk.f32.mxu0 %vm3291_vm0, %v3292_v1 }
0x13dd   :  { %3065 = vmatprep.subr.bf16.mxu0 %v3290_v0 }
0x13e0   :  { %3067 = vmatpush3.bf16.msra.mxu0 %v3625_v40 }
0x13e1   :  { %3074 = vmatprep.subr.bf16.mxu0 %v3290_v0 }
0x14a6   :  { %v1367_v42 = vpop.f32.mrb[12].mxu1  ;;  %v1448_v43 = vpop.f32.mrb[14].mxu0 }
0x14a7   :  { %v1368_v44 = vadd.f32 %v3475_v46, %v1367_v42  ;;  %v1452_v45 = vadd.f32 %v1448_v43, %v1381_v41  ;;  %v2843_v47 = vpop.f32.mrb[13].mxu1  ;;  %v2854_v48 = vpop.f32.mrb[15].mxu0 }
0x14a8   :  { %v1763_v48 = vld [vmem:[#allocation2 + $0x4] sm:$0x3] }
0x14a9   :  { %1372 = vst [vmem:[#allocation2 + $0xc] sm:$0x3] %v1368_v44  ;;  %v2552_v49 = vmul.f32 -1.442695, %v1452_v45 }
0x14ab   :  { %3166 = vpow2.f32 %v2552_v49 }
0x14ae   :  { %v1622_v51 = vpop.f32.mrb[16].mxu0 }
0x14af   :  { %v1626_v52 = vadd.f32 %v1622_v51, %v1555_v50  ;;  %v2876_v53 = vpop.f32.mrb[17].mxu0 }
0x14b1   :  { %v2554_v54 = vmul.f32 -1.442695, %v1626_v52 }
0x14b3   :  { %3168 = vpow2.f32 %v2554_v54 }
0x14b4   :  { %3170 = vtanh.f32 %v1452_v45 }
0x14b5   :  { %v3167_v55 = vpop.eup %3166 }
0x14b6   :  { %v1457_v11 = vadd.f32 1.0, %v3167_v55 }
0x14b8   :  { %3172 = vrcp.f32 %v1457_v11 }
0x14b9   :  { %3174 = vtanh.f32 %v1626_v52 }
0x14bd   :  { %v3169_v13 = vpop.eup %3168 }
0x14be   :  { %v1631_v56 = vadd.f32 1.0, %v3169_v13  ;;  %v3171_v57 = vpop.eup %3170 }
0x14c0   :  { %3176 = vrcp.f32 %v1631_v56 }
0x14c2   :  { %v3173_v58 = vpop.eup %3172 }
0x14c3   :  { %v1460_v59 = vsel %vm3423_vm3, %v3171_v57, %v3173_v58  ;;  %v3175_v60 = vpop.eup %3174 }
0x14c4   :  { %1463 = vrot.lane.b32.xlu0 %v1460_v59, %s3294_s1  ;;  %v1461_v4 = vmul.f32 %v1460_v59, %v3612_v27  ;;  %v1658_v27 = vld [vmem:[#allocation2 + $0x2] sm:$0x3] }
0x14ca   :  { %v3177_v61 = vpop.eup %3176 }
0x14cb   :  { %v1634_v62 = vsel %vm3423_vm3, %v3175_v60, %v3177_v61 }
0x14cc   :  { %1637 = vrot.lane.b32.xlu1 %v1634_v62, %s3294_s1  ;;  %v1635_v8 = vmul.f32 0.0, %v1634_v62 }
0x1536   :  { %v1464_v63 = vpop.permute.xlu0 %1463 }
0x1537   :  { %v1466_v2 = vmul.f32 %v1464_v63, %v1460_v59 }
0x1539   :  { %1468 = vrot.lane.b32.xlu0 %v1466_v2, %s3295_s3 }
0x153e   :  { %v1638_v6 = vpop.permute.xlu1 %1637 }
0x153f   :  { %v1640_v3 = vmul.f32 %v1638_v6, %v1634_v62  ;;  %v1868_v6 = vld [vmem:[#allocation2 + $0x6] sm:$0x3] }
0x1541   :  { %1642 = vrot.lane.b32.xlu1 %v1640_v3, %s3295_s3 }
0x15ab   :  { %v1469_v5 = vpop.permute.xlu0 %1468 }
0x15ac   :  { %v1471_v7 = vadd.f32 %v1469_v5, %v1461_v4 }
0x15ae   :  { %3178 = vtanh.f32 %v1471_v7 }
0x15b3   :  { %v1643_v10 = vpop.permute.xlu1 %1642 }
0x15b4   :  { %v1645_v12 = vadd.f32 %v1643_v10, %v1635_v8 }
0x15b6   :  { %3180 = vtanh.f32 %v1645_v12 }
0x15b8   :  { %v3179_v14 = vpop.eup %3178 }
0x15b9   :  { %1474 = vrot.lane.b32.xlu0 %v3179_v14, %s3294_s1 }
0x15c0   :  { %v3181_v9 = vpop.eup %3180 }
0x15c1   :  { %1648 = vrot.lane.b32.xlu1 %v3181_v9, %s3294_s1 }
0x162b   :  { %v1475_v15 = vpop.permute.xlu0 %1474 }
0x162c   :  { %v1477_v16 = vmul.f32 %v1475_v15, %v1460_v59 }
0x162e   :  { %1479 = vrot.lane.b32.xlu0 %v1477_v16, %s3295_s3 }
0x1633   :  { %v1649_v17 = vpop.permute.xlu1 %1648 }
0x1634   :  { %v1651_v18 = vmul.f32 %v1649_v17, %v1634_v62 }
0x1636   :  { %1653 = vrot.lane.b32.xlu1 %v1651_v18, %s3295_s3 }
0x16a0   :  { %v1480_v19 = vpop.permute.xlu0 %1479 }
0x16a1   :  { %2864 = vmatmul.mubr.msk.f32.vlgmr.msra.gmra.mrb[14].mxu1 %vm99_vm4, %v1480_v19 }
0x16a2   :  { %3058 = vmatpush3.bf16.msra.mxu1 %v3620_v34  ;;  %2885 = vmatprep.mubr.msk.f32.mxu1 %vm3291_vm0, %v3292_v1 }
0x16a3   :  { %3059 = vmatprep.subr.bf16.mxu1 %v3290_v0 }
0x16a6   :  { %3061 = vmatpush3.bf16.msra.mxu1 %v3625_v40 }
0x16a7   :  { %3068 = vmatprep.subr.bf16.mxu1 %v3290_v0 }
0x16a8   :  { %v1654_v21 = vpop.permute.xlu1 %1653 }
0x16a9   :  { %1657 = vst.msk [vmem:[#allocation3] sm:$0x3] %vm1656_vm5, %v1654_v21  ;;  %2886 = vmatmul.mubr.msk.f32.vlgmr.msra.gmra.mrb[16].mxu1 %vm99_vm4, %v1654_v21 }
0x16aa   :  { %3070 = vmatpush3.bf16.msra.mxu1 %v3620_v34  ;;  %2907 = vmatprep.mubr.msk.f32.mxu1 %vm3291_vm0, %v3292_v1 }
0x16ab   :  { %3071 = vmatprep.subr.bf16.mxu1 %v3290_v0 }
0x16ae   :  { %3073 = vmatpush3.bf16.msra.mxu1 %v3625_v40 }
0x16af   :  { %3080 = vmatprep.subr.bf16.mxu1 %v3290_v0 }
0x1774   :  { %v1549_v24 = vpop.f32.mrb[14].mxu1 }
0x1775   :  { %v1550_v25 = vadd.f32 %v3475_v46, %v1549_v24  ;;  %v2865_v26 = vpop.f32.mrb[15].mxu1 }
0x1777   :  { %1554 = vst [vmem:[#allocation2 + $0xe] sm:$0x3] %v1550_v25 }
0x177c   :  { %v1727_v28 = vpop.f32.mrb[16].mxu1 }
0x177d   :  { %v1731_v29 = vadd.f32 %v1727_v28, %v1658_v27  ;;  %v2887_v30 = vpop.f32.mrb[17].mxu1  ;;  %v1973_v27 = vld [vmem:[#allocation2 + $0x8] sm:$0x3] }
0x177f   :  { %v2556_v31 = vmul.f32 -1.442695, %v1731_v29 }
0x1781   :  { %3182 = vpow2.f32 %v2556_v31 }
0x1782   :  { %3184 = vtanh.f32 %v1731_v29 }
0x178b   :  { %v3183_v32 = vpop.eup %3182 }
0x178c   :  { %v1736_v33 = vadd.f32 1.0, %v3183_v32  ;;  %v3185_v36 = vpop.eup %3184 }
0x178e   :  { %3186 = vrcp.f32 %v1736_v33 }
0x1798   :  { %v3187_v38 = vpop.eup %3186 }
0x1799   :  { %v1739_v39 = vsel %vm3423_vm3, %v3185_v36, %v3187_v38 }
0x179a   :  { %1742 = vrot.lane.b32.xlu0 %v1739_v39, %s3294_s1  ;;  %v1740_v37 = vmul.f32 %v1739_v39, %v1645_v12 }
0x180c   :  { %v1743_v46 = vpop.permute.xlu0 %1742 }
0x180d   :  { %v1745_v35 = vmul.f32 %v1743_v46, %v1739_v39 }
0x180f   :  { %1747 = vrot.lane.b32.xlu1 %v1745_v35, %s3295_s3 }
0x1881   :  { %v1748_v41 = vpop.permute.xlu1 %1747 }
0x1882   :  { %v1750_v42 = vadd.f32 %v1748_v41, %v1740_v37 }
0x1884   :  { %3188 = vtanh.f32 %v1750_v42 }
0x188e   :  { %v3189_v43 = vpop.eup %3188 }
0x188f   :  { %1753 = vrot.lane.b32.xlu0 %v3189_v43, %s3294_s1 }
0x1901   :  { %v1754_v44 = vpop.permute.xlu0 %1753 }
0x1902   :  { %v1756_v45 = vmul.f32 %v1754_v44, %v1739_v39 }
0x1904   :  { %1758 = vrot.lane.b32.xlu1 %v1756_v45, %s3295_s3 }
0x1976   :  { %v1759_v47 = vpop.permute.xlu1 %1758 }
0x1977   :  { %1762 = vst.msk [vmem:[#allocation3 + $0x2] sm:$0x3] %vm1656_vm5, %v1759_v47  ;;  %2897 = vmatmul.mubr.msk.f32.vlgmr.msra.gmra.mrb[18].mxu0 %vm99_vm4, %v1759_v47 }
0x1978   :  { %3076 = vmatpush3.bf16.msra.mxu0 %v3620_v34  ;;  %2918 = vmatprep.mubr.msk.f32.mxu0 %vm3291_vm0, %v3292_v1 }
0x1979   :  { %3077 = vmatprep.subr.bf16.mxu0 %v3290_v0 }
0x197c   :  { %3079 = vmatpush3.bf16.msra.mxu0 %v3625_v40 }
0x197d   :  { %3086 = vmatprep.subr.bf16.mxu0 %v3290_v0 }
0x1a4a   :  { %v1832_v49 = vpop.f32.mrb[18].mxu0 }
0x1a4b   :  { %v1836_v50 = vadd.f32 %v1832_v49, %v1763_v48  ;;  %v2898_v51 = vpop.f32.mrb[19].mxu0  ;;  %v2078_v48 = vld [vmem:[#allocation2 + $0xa] sm:$0x3] }
0x1a4d   :  { %v2558_v52 = vmul.f32 -1.442695, %v1836_v50 }
0x1a4f   :  { %3190 = vpow2.f32 %v2558_v52 }
0x1a50   :  { %3192 = vtanh.f32 %v1836_v50 }
0x1a59   :  { %v3191_v53 = vpop.eup %3190 }
0x1a5a   :  { %v1841_v54 = vadd.f32 1.0, %v3191_v53  ;;  %v3193_v55 = vpop.eup %3192 }
0x1a5c   :  { %3194 = vrcp.f32 %v1841_v54 }
0x1a66   :  { %v3195_v11 = vpop.eup %3194 }
0x1a67   :  { %v1844_v13 = vsel %vm3423_vm3, %v3193_v55, %v3195_v11 }
0x1a68   :  { %1847 = vrot.lane.b32.xlu0 %v1844_v13, %s3294_s1  ;;  %v1845_v58 = vmul.f32 %v1844_v13, %v1750_v42 }
0x1ada   :  { %v1848_v56 = vpop.permute.xlu0 %1847 }
0x1adb   :  { %v1850_v57 = vmul.f32 %v1848_v56, %v1844_v13 }
0x1add   :  { %1852 = vrot.lane.b32.xlu1 %v1850_v57, %s3295_s3 }
0x1b4f   :  { %v1853_v59 = vpop.permute.xlu1 %1852 }
0x1b50   :  { %v1855_v60 = vadd.f32 %v1853_v59, %v1845_v58 }
0x1b52   :  { %3196 = vtanh.f32 %v1855_v60 }
0x1b5c   :  { %v3197_v61 = vpop.eup %3196 }
0x1b5d   :  { %1858 = vrot.lane.b32.xlu0 %v3197_v61, %s3294_s1  ;;  %v2183_v61 = vld [vmem:[#allocation2 + $0xc] sm:$0x3] }
0x1bcf   :  { %v1859_v62 = vpop.permute.xlu0 %1858 }
0x1bd0   :  { %v1861_v63 = vmul.f32 %v1859_v62, %v1844_v13 }
0x1bd2   :  { %1863 = vrot.lane.b32.xlu1 %v1861_v63, %s3295_s3 }
0x1c44   :  { %v1864_v2 = vpop.permute.xlu1 %1863 }
0x1c45   :  { %1867 = vst.msk [vmem:[#allocation3 + $0x4] sm:$0x3] %vm1656_vm5, %v1864_v2  ;;  %2908 = vmatmul.mubr.msk.f32.vlgmr.msra.gmra.mrb[18].mxu1 %vm99_vm4, %v1864_v2 }
0x1c46   :  { %3082 = vmatpush3.bf16.msra.mxu1 %v3620_v34  ;;  %2929 = vmatprep.mubr.msk.f32.mxu1 %vm3291_vm0, %v3292_v1 }
0x1c47   :  { %3083 = vmatprep.subr.bf16.mxu1 %v3290_v0 }
0x1c4a   :  { %3085 = vmatpush3.bf16.msra.mxu1 %v3625_v40 }
0x1c4b   :  { %3092 = vmatprep.subr.bf16.mxu1 %v3290_v0 }
0x1d18   :  { %v1937_v3 = vpop.f32.mrb[18].mxu1 }
0x1d19   :  { %v1941_v4 = vadd.f32 %v1937_v3, %v1868_v6  ;;  %v2909_v5 = vpop.f32.mrb[19].mxu1 }
0x1d1b   :  { %v2560_v7 = vmul.f32 -1.442695, %v1941_v4 }
0x1d1d   :  { %3198 = vpow2.f32 %v2560_v7 }
0x1d1e   :  { %3200 = vtanh.f32 %v1941_v4 }
0x1d27   :  { %v3199_v8 = vpop.eup %3198 }
0x1d28   :  { %v1946_v10 = vadd.f32 1.0, %v3199_v8  ;;  %v3201_v12 = vpop.eup %3200 }
0x1d2a   :  { %3202 = vrcp.f32 %v1946_v10 }
0x1d34   :  { %v3203_v14 = vpop.eup %3202 }
0x1d35   :  { %v1949_v9 = vsel %vm3423_vm3, %v3201_v12, %v3203_v14 }
0x1d36   :  { %1952 = vrot.lane.b32.xlu0 %v1949_v9, %s3294_s1  ;;  %v1950_v17 = vmul.f32 %v1949_v9, %v1855_v60 }
0x1da8   :  { %v1953_v15 = vpop.permute.xlu0 %1952 }
0x1da9   :  { %v1955_v16 = vmul.f32 %v1953_v15, %v1949_v9 }
0x1dab   :  { %1957 = vrot.lane.b32.xlu1 %v1955_v16, %s3295_s3 }
0x1e1d   :  { %v1958_v18 = vpop.permute.xlu1 %1957 }
0x1e1e   :  { %v1960_v19 = vadd.f32 %v1958_v18, %v1950_v17 }
0x1e20   :  { %3204 = vtanh.f32 %v1960_v19 }
0x1e2a   :  { %v3205_v21 = vpop.eup %3204 }
0x1e2b   :  { %1963 = vrot.lane.b32.xlu0 %v3205_v21, %s3294_s1  ;;  %v2288_v21 = vld [vmem:[#allocation2 + $0xe] sm:$0x3] }
0x1e9d   :  { %v1964_v24 = vpop.permute.xlu0 %1963 }
0x1e9e   :  { %v1966_v25 = vmul.f32 %v1964_v24, %v1949_v9 }
0x1ea0   :  { %1968 = vrot.lane.b32.xlu1 %v1966_v25, %s3295_s3 }
0x1f12   :  { %v1969_v26 = vpop.permute.xlu1 %1968 }
0x1f13   :  { %1972 = vst.msk [vmem:[#allocation3 + $0x6] sm:$0x3] %vm1656_vm5, %v1969_v26  ;;  %2919 = vmatmul.mubr.msk.f32.vlgmr.msra.gmra.mrb[20].mxu0 %vm99_vm4, %v1969_v26 }
0x1f14   :  { %3088 = vmatpush3.bf16.msra.mxu0 %v3620_v34  ;;  %2940 = vmatprep.mubr.msk.f32.mxu0 %vm3291_vm0, %v3292_v1 }
0x1f15   :  { %3089 = vmatprep.subr.bf16.mxu0 %v3290_v0 }
0x1f18   :  { %3091 = vmatpush3.bf16.msra.mxu0 %v3625_v40 }
0x1fe6   :  { %v2042_v28 = vpop.f32.mrb[20].mxu0 }
0x1fe7   :  { %v2046_v29 = vadd.f32 %v2042_v28, %v1973_v27  ;;  %v2920_v30 = vpop.f32.mrb[21].mxu0 }
0x1fe9   :  { %v2562_v31 = vmul.f32 -1.442695, %v2046_v29 }
0x1feb   :  { %3206 = vpow2.f32 %v2562_v31 }
0x1fec   :  { %3208 = vtanh.f32 %v2046_v29 }
0x1ff5   :  { %v3207_v32 = vpop.eup %3206 }
0x1ff6   :  { %v2051_v33 = vadd.f32 1.0, %v3207_v32  ;;  %v3209_v36 = vpop.eup %3208 }
0x1ff8   :  { %3210 = vrcp.f32 %v2051_v33 }
0x2002   :  { %v3211_v38 = vpop.eup %3210 }
0x2003   :  { %v2054_v39 = vsel %vm3423_vm3, %v3209_v36, %v3211_v38 }
0x2004   :  { %2057 = vrot.lane.b32.xlu0 %v2054_v39, %s3294_s1  ;;  %v2055_v37 = vmul.f32 %v2054_v39, %v1960_v19 }
0x2076   :  { %v2058_v46 = vpop.permute.xlu0 %2057 }
0x2077   :  { %v2060_v35 = vmul.f32 %v2058_v46, %v2054_v39 }
0x2079   :  { %2062 = vrot.lane.b32.xlu1 %v2060_v35, %s3295_s3 }
0x20eb   :  { %v2063_v41 = vpop.permute.xlu1 %2062 }
0x20ec   :  { %v2065_v42 = vadd.f32 %v2063_v41, %v2055_v37  ;;  %v2393_v37 = vld [vmem:[#allocation3] sm:$0x3] }
0x20ed   :  { %v2401_v41 = vmax.f32 %v2393_v37, 0.0 }
0x20ee   :  { %3212 = vtanh.f32 %v2065_v42 }
0x20f8   :  { %v3213_v43 = vpop.eup %3212 }
0x20f9   :  { %2068 = vrot.lane.b32.xlu0 %v3213_v43, %s3294_s1  ;;  %v2395_v43 = vld [vmem:[#allocation3 + $0x4] sm:$0x3] }
0x20fa   :  { %v2403_v23 = vmax.f32 %v2395_v43, 0.0 }
0x216b   :  { %v2069_v44 = vpop.permute.xlu0 %2068 }
0x216c   :  { %v2071_v45 = vmul.f32 %v2069_v44, %v2054_v39 }
0x216e   :  { %2073 = vrot.lane.b32.xlu1 %v2071_v45, %s3295_s3  ;;  %v2396_v45 = vld [vmem:[#allocation3 + $0x6] sm:$0x3] }
0x21e0   :  { %v2074_v47 = vpop.permute.xlu1 %2073 }
0x21e1   :  { %2077 = vst.msk [vmem:[#allocation3 + $0x8] sm:$0x3] %vm1656_vm5, %v2074_v47  ;;  %2930 = vmatmul.mubr.msk.f32.vlgmr.msra.gmra.mrb[20].mxu1 %vm99_vm4, %v2074_v47 }
0x21e2   :  { %3094 = vmatpush3.bf16.msra.mxu1 %v3620_v34  ;;  %2951 = vmatprep.mubr.msk.f32.mxu1 %vm3291_vm0, %v3292_v1 }
0x21e3   :  { %3095 = vmatprep.subr.bf16.mxu1 %v3290_v0 }
0x21e6   :  { %3097 = vmatpush3.bf16.msra.mxu1 %v3625_v40 }
0x22b4   :  { %v2147_v49 = vpop.f32.mrb[20].mxu1 }
0x22b5   :  { %v2151_v50 = vadd.f32 %v2147_v49, %v2078_v48  ;;  %v2931_v51 = vpop.f32.mrb[21].mxu1  ;;  %v2404_v49 = vmax.f32 %v2396_v45, 0.0 }
0x22b7   :  { %v2564_v52 = vmul.f32 -1.442695, %v2151_v50 }
0x22b9   :  { %3214 = vpow2.f32 %v2564_v52 }
0x22ba   :  { %3216 = vtanh.f32 %v2151_v50 }
0x22c3   :  { %v3215_v53 = vpop.eup %3214 }
0x22c4   :  { %v2156_v54 = vadd.f32 1.0, %v3215_v53  ;;  %v3217_v55 = vpop.eup %3216 }
0x22c6   :  { %3218 = vrcp.f32 %v2156_v54 }
0x22d0   :  { %v3219_v11 = vpop.eup %3218 }
0x22d1   :  { %v2159_v34 = vsel %vm3423_vm3, %v3217_v55, %v3219_v11 }
0x22d2   :  { %2162 = vrot.lane.b32.xlu0 %v2159_v34, %s3294_s1  ;;  %v2160_v40 = vmul.f32 %v2159_v34, %v2065_v42  ;;  %v2569_v42 = vld [vmem:[#allocation7] ss:$0 sm:$0xff] }
0x22d3   :  { %v2416_v44 = vmul.f32 %v2569_v42, %v2401_v41  ;;  %v2418_v48 = vmul.f32 %v2569_v42, %v2403_v23  ;;  %v2419_v52 = vmul.f32 %v2569_v42, %v2404_v49 }
0x22d5   :  { %v2424_v47 = vsel %vm1656_vm5, %v2416_v44, 0.0  ;;  %v2430_v51 = vsel %vm1656_vm5, %v2418_v48, 0.0  ;;  %v2433_v54 = vsel %vm1656_vm5, %v2419_v52, 0.0 }
0x2344   :  { %v2163_v0 = vpop.permute.xlu0 %2162 }
0x2345   :  { %v2165_v1 = vmul.f32 %v2163_v0, %v2159_v34 }
0x2347   :  { %2167 = vrot.lane.b32.xlu1 %v2165_v1, %s3295_s3  ;;  %v2394_v1 = vld [vmem:[#allocation3 + $0x2] sm:$0x3] }
0x23b9   :  { %v2168_v13 = vpop.permute.xlu1 %2167 }
0x23ba   :  { %v2170_v56 = vadd.f32 %v2168_v13, %v2160_v40  ;;  %v2402_v40 = vmax.f32 %v2394_v1, 0.0  ;;  %v2397_v13 = vld [vmem:[#allocation3 + $0x8] sm:$0x3] }
0x23bc   :  { %3220 = vtanh.f32 %v2170_v56 }
0x23c6   :  { %v3221_v57 = vpop.eup %3220 }
0x23c7   :  { %2173 = vrot.lane.b32.xlu0 %v3221_v57, %s3294_s1  ;;  %v2405_v57 = vmax.f32 %v2397_v13, 0.0 }
0x2439   :  { %v2174_v58 = vpop.permute.xlu0 %2173 }
0x243a   :  { %v2176_v59 = vmul.f32 %v2174_v58, %v2159_v34 }
0x243c   :  { %2178 = vrot.lane.b32.xlu1 %v2176_v59, %s3295_s3 }
0x24ae   :  { %v2179_v60 = vpop.permute.xlu1 %2178 }
0x24af   :  { %2182 = vst.msk [vmem:[#allocation3 + $0xa] sm:$0x3] %vm1656_vm5, %v2179_v60  ;;  %2941 = vmatmul.mubr.msk.f32.vlgmr.msra.gmra.mrb[22].mxu0 %vm99_vm4, %v2179_v60  ;;  %v2420_v60 = vmul.f32 %v2569_v42, %v2405_v57 }
0x24b6   :  { %v2398_v50 = vld [vmem:[#allocation3 + $0xa] sm:$0x3] }
0x24b7   :  { %v2406_v53 = vmax.f32 %v2398_v50, 0.0 }
0x24b9   :  { %v2421_v55 = vmul.f32 %v2569_v42, %v2406_v53 }
0x24bb   :  { %v2439_v11 = vsel %vm1656_vm5, %v2421_v55, 0.0 }
0x2582   :  { %v2252_v62 = vpop.f32.mrb[22].mxu0 }
0x2583   :  { %v2256_v63 = vadd.f32 %v2252_v62, %v2183_v61  ;;  %v2942_v2 = vpop.f32.mrb[23].mxu0  ;;  %v2436_v62 = vsel %vm1656_vm5, %v2420_v60, 0.0 }
0x2585   :  { %v2566_v6 = vmul.f32 -1.442695, %v2256_v63 }
0x2587   :  { %3222 = vpow2.f32 %v2566_v6 }
0x2588   :  { %3224 = vtanh.f32 %v2256_v63 }
0x2591   :  { %v3223_v3 = vpop.eup %3222 }
0x2592   :  { %v2261_v4 = vadd.f32 1.0, %v3223_v3  ;;  %v3225_v5 = vpop.eup %3224 }
0x2594   :  { %3226 = vrcp.f32 %v2261_v4 }
0x259e   :  { %v3227_v7 = vpop.eup %3226 }
0x259f   :  { %v2264_v8 = vsel %vm3423_vm3, %v3225_v5, %v3227_v7 }
0x25a0   :  { %2267 = vrot.lane.b32.xlu0 %v2264_v8, %s3294_s1  ;;  %v2265_v14 = vmul.f32 %v2264_v8, %v2170_v56  ;;  %v2417_v56 = vmul.f32 %v2569_v42, %v2402_v40 }
0x25a2   :  { %v2427_v59 = vsel %vm1656_vm5, %v2417_v56, 0.0 }
0x2612   :  { %v2268_v10 = vpop.permute.xlu0 %2267 }
0x2613   :  { %v2270_v12 = vmul.f32 %v2268_v10, %v2264_v8 }
0x2615   :  { %2272 = vrot.lane.b32.xlu1 %v2270_v12, %s3295_s3  ;;  %v2467_v12 = vshrl.u32 %v74_v20, 7 }
0x2687   :  { %v2273_v9 = vpop.permute.xlu1 %2272 }
0x2688   :  { %v2275_v15 = vadd.f32 %v2273_v9, %v2265_v14  ;;  %v2449_v14 = vstv %s3778_s8 }
0x268a   :  { %3228 = vtanh.f32 %v2275_v15 }
0x2694   :  { %v3229_v16 = vpop.eup %3228 }
0x2695   :  { %2278 = vrot.lane.b32.xlu0 %v3229_v16, %s3294_s1  ;;  %v2468_v16 = vsub.s32 %v3419_v22, %v2467_v12 }
0x2707   :  { %v2279_v17 = vpop.permute.xlu0 %2278 }
0x2708   :  { %v2281_v18 = vmul.f32 %v2279_v17, %v2264_v8 }
0x270a   :  { %2283 = vrot.lane.b32.xlu1 %v2281_v18, %s3295_s3 }
0x277c   :  { %v2284_v19 = vpop.permute.xlu1 %2283 }
0x277d   :  { %2287 = vst.msk [vmem:[#allocation3 + $0xc] sm:$0x3] %vm1656_vm5, %v2284_v19  ;;  %2952 = vmatmul.mubr.msk.f32.vlgmr.msra.gmra.mrb[22].mxu1 %vm99_vm4, %v2284_v19 }
0x2784   :  { %v2399_v58 = vld [vmem:[#allocation3 + $0xc] sm:$0x3] }
0x2785   :  { %v2407_v61 = vmax.f32 %v2399_v58, 0.0 }
0x2787   :  { %v2422_v63 = vmul.f32 %v2569_v42, %v2407_v61 }
0x2789   :  { %v2442_v2 = vsel %vm1656_vm5, %v2422_v63, 0.0 }
0x2850   :  { %v2357_v24 = vpop.f32.mrb[22].mxu1 }
0x2851   :  { %v2361_v25 = vadd.f32 %v2357_v24, %v2288_v21  ;;  %v2953_v26 = vpop.f32.mrb[23].mxu1 }
0x2853   :  { %v2568_v27 = vmul.f32 -1.442695, %v2361_v25 }
0x2855   :  { %3230 = vpow2.f32 %v2568_v27 }
0x2856   :  { %3232 = vtanh.f32 %v2361_v25 }
0x285f   :  { %v3231_v28 = vpop.eup %3230 }
0x2860   :  { %v2366_v29 = vadd.f32 1.0, %v3231_v28  ;;  %v3233_v30 = vpop.eup %3232 }
0x2862   :  { %3234 = vrcp.f32 %v2366_v29 }
0x286c   :  { %v3235_v31 = vpop.eup %3234 }
0x286d   :  { %v2369_v32 = vsel %vm3423_vm3, %v3233_v30, %v3235_v31 }
0x286e   :  { %2372 = vrot.lane.b32.xlu0 %v2369_v32, %s3294_s1  ;;  %v2370_v38 = vmul.f32 %v2369_v32, %v2275_v15 }
0x28e0   :  { %v2373_v33 = vpop.permute.xlu0 %2372 }
0x28e1   :  { %v2375_v36 = vmul.f32 %v2373_v33, %v2369_v32 }
0x28e3   :  { %2377 = vrot.lane.b32.xlu1 %v2375_v36, %s3295_s3 }
0x2955   :  { %v2378_v39 = vpop.permute.xlu1 %2377 }
0x2956   :  { %v2380_v46 = vadd.f32 %v2378_v39, %v2370_v38 }
0x2958   :  { %3236 = vtanh.f32 %v2380_v46 }
0x2962   :  { %v3237_v35 = vpop.eup %3236 }
0x2963   :  { %2383 = vrot.lane.b32.xlu0 %v3237_v35, %s3294_s1 }
0x2982   :  { %2425 = vadd.xlane.f32.xlu0 %v2424_v47 }
0x2986   :  { %2431 = vadd.xlane.f32.xlu0 %v2430_v51 }
0x298a   :  { %2434 = vadd.xlane.f32.xlu0 %v2433_v54 }
0x298e   :  { %2440 = vadd.xlane.f32.xlu0 %v2439_v11 }
0x29d5   :  { %v2384_v34 = vpop.permute.xlu0 %2383 }
0x29d6   :  { %v2386_v0 = vmul.f32 %v2384_v34, %v2369_v32 }
0x29d8   :  { %2388 = vrot.lane.b32.xlu1 %v2386_v0, %s3295_s3 }
0x29fc   :  { %2428 = vadd.xlane.f32.xlu1 %v2427_v59 }
0x2a00   :  { %2437 = vadd.xlane.f32.xlu1 %v2436_v62 }
0x2a04   :  { %2443 = vadd.xlane.f32.xlu1 %v2442_v2 }
0x2a0f   :  { %v2426_v8 = vpop.xlane.xlu0 %2425 }
0x2a10   :  { %v2450_v17 = vadd.f32 %v2449_v14, %v2426_v8 }
0x2a12   :  { %v2469_v25 = vrot.slane %v2450_v17, %v2468_v16 }
0x2a13   :  { %v2432_v9 = vpop.xlane.xlu0 %2431 }
0x2a14   :  { %v2452_v21 = vadd.f32 %v2449_v14, %v2432_v9 }
0x2a16   :  { %v2477_v28 = vrot.slane %v2452_v21, %v2468_v16 }
0x2a17   :  { %v2435_v24 = vpop.xlane.xlu0 %2434 }
0x2a18   :  { %v2453_v26 = vadd.f32 %v2449_v14, %v2435_v24 }
0x2a1a   :  { %v2481_v32 = vrot.slane %v2453_v26, %v2468_v16 }
0x2a1b   :  { %v2441_v30 = vpop.xlane.xlu0 %2440 }
0x2a1c   :  { %v2455_v22 = vadd.f32 %v2449_v14, %v2441_v30 }
0x2a1e   :  { %v2489_v37 = vrot.slane %v2455_v22, %v2468_v16 }
0x2a4a   :  { %v2389_v6 = vpop.permute.xlu1 %2388 }
0x2a4b   :  { %2392 = vst.msk [vmem:[#allocation3 + $0xe] sm:$0x3] %vm1656_vm5, %v2389_v6 }
0x2a52   :  { %v2400_v3 = vld [vmem:[#allocation3 + $0xe] sm:$0x3] }
0x2a53   :  { %v2408_v4 = vmax.f32 %v2400_v3, 0.0 }
0x2a55   :  { %v2423_v5 = vmul.f32 %v2569_v42, %v2408_v4 }
0x2a57   :  { %v2445_v7 = vsel %vm1656_vm5, %v2423_v5, 0.0 }
0x2a58   :  { %2446 = vadd.xlane.f32.xlu0 %v2445_v7 }
0x2a89   :  { %v2429_v10 = vpop.xlane.xlu1 %2428 }
0x2a8a   :  { %v2451_v15 = vadd.f32 %v2449_v14, %v2429_v10 }
0x2a8c   :  { %v2473_v18 = vrot.slane %v2451_v15, %v2468_v16 }
0x2a8d   :  { %v2438_v19 = vpop.xlane.xlu1 %2437 }
0x2a8e   :  { %v2499_v27 = vsel %vm2498_vm6, %v2473_v18, %v2469_v25  ;;  %v2454_v20 = vadd.f32 %v2449_v14, %v2438_v19 }
0x2a8f   :  { %v2501_v31 = vsel %vm2500_vm7, %v2477_v28, %v2499_v27 }
0x2a90   :  { %v2485_v33 = vrot.slane %v2454_v20, %v2468_v16  ;;  %v2503_v38 = vsel %vm2502_vm8, %v2481_v32, %v2501_v31 }
0x2a91   :  { %v2444_v29 = vpop.xlane.xlu1 %2443 }
0x2a92   :  { %v2456_v36 = vadd.f32 %v2449_v14, %v2444_v29  ;;  %v2505_v39 = vsel %vm2504_vm9, %v2485_v33, %v2503_v38 }
0x2a93   :  { %v2507_v42 = vsel %vm2506_vm10, %v2489_v37, %v2505_v39 }
0x2a94   :  { %v2493_v46 = vrot.slane %v2456_v36, %v2468_v16 }
0x2a96   :  { %v2509_v44 = vsel %vm2508_vm11, %v2493_v46, %v2507_v42 }
0x2ae5   :  { %v2447_v35 = vpop.xlane.xlu0 %2446 }
0x2ae6   :  { %v2457_v41 = vadd.f32 %v2449_v14, %v2447_v35 }
0x2ae8   :  { %v2497_v43 = vrot.slane %v2457_v41, %v2468_v16 }
0x2aea   :  { %v2511_v23 = vsel %vm2510_vm12, %v2497_v43, %v2509_v44 }
0x2aeb   :  { %2514 = vst.msk [vmem:[%s3779_s9] sm:$0xff] %vm2513_vm13, %v2511_v23 }
0x2aec   :  { %2519 = vsyncpa [#allocation6], 1 }
0x2aed   :  { %2520 = vsyncpa [#allocation8], 1 }

</bundles_post_ra>
